<compile_context>
chip_gen: v7x
topology: tpu7x:2x2x1
jax: 0.10.0
libtpu: 0.0.40
codegen_flags: <defaults>
</compile_context>

<pallas_src>
import jax
import jax.numpy as jnp
import numpy as np
from jax import lax
from jax.experimental import pallas as pl
from jax.experimental.pallas import tpu as pltpu

# ---- shapes implied by the PyTorch module (MNIST-style input) ---------------
B = 2                       # batch
C_IN, H_IN, W_IN = 1, 28, 28
K = 5                       # conv kernel size
C_OUT = 32
H_CONV = H_IN - K + 1       # 24
W_CONV = W_IN - K + 1       # 24
H_POOL, W_POOL = H_CONV // 2, W_CONV // 2   # 12, 12
FLAT = C_OUT * H_POOL * W_POOL              # 4608
HID = 128
N_CLS = 10

HALF = W_POOL * C_OUT       # 384  (pooled-x, channel) lane block
COLS = 2 * HALF             # 768  conv column layout: x_parity*384 + xp*32 + c
M_ROWS = 2 * H_POOL * B     # 48   conv row layout:    y_parity*24  + yp*B + b
K_CONV = K * W_IN           # 140  conv contraction:   kh*28 + x_in


def _full_spec(shape):
    nd = len(shape)
    return pl.BlockSpec(shape, lambda i, _nd=nd: (0,) * _nd)


# -----------------------------------------------------------------------------
# Fused forward kernel
#   lhs_ref : (48, 140)   bf16  row-im2col input (y_par*24+yp*B+b, kh*28+x_in)
#   m_ref   : (140, 768)  bf16  banded conv weights (kh*28+x_in, px*384+xp*32+c)
#   cb_ref  : (1, 384)    f32   conv bias in pooled-column layout (xp*32+c)
#   w1q_hbm : (4608, 128) int8  fc1 weight (rows permuted to kernel flat order)
#   s1_ref  : (1, 128)    f32   per-output-column dequant scales for w1q
#   b1_ref  : (1, 128)    f32
#   w2_ref  : (128, 10)   f32
#   b2_ref  : (1, 10)     f32
#   o_ref   : (B, 10)     f32
#   scratch : w1_vmem (4608,128) int8, w1_sem DMA, flat (B,4608) bf16
# -----------------------------------------------------------------------------
def fused_cnn_kernel(lhs_ref, m_ref, cb_ref, w1q_hbm, s1_ref, b1_ref, w2_ref,
                     b2_ref, o_ref, w1_vmem, w1_sem, flat_ref):
    # Kick off the fc1-weight DMA (HBM -> VMEM, int8 = half the bf16 bytes) so
    # it overlaps the conv/pool compute below.
    w1_copy = pltpu.make_async_copy(w1q_hbm, w1_vmem, w1_sem)
    w1_copy.start()

    # ---- conv1 as ONE MXU matmul ---------------------------------------------
    #   conv[y_par*24 + yp*B + b, px*384 + xp*32 + c] = conv1(x)[b,c,2yp+y_par,2xp+px]
    conv = jnp.dot(lhs_ref[...], m_ref[...],
                   preferred_element_type=jnp.float32)          # (48, 768) f32

    # ---- 2x2/2 max-pool (pure elementwise maxima, no relayout) ---------------
    ym = jnp.maximum(conv[:H_POOL * B, :], conv[H_POOL * B:, :])  # max over window rows
    pooled = jnp.maximum(ym[:, :HALF], ym[:, HALF:])              # max over window cols
    # bias + ReLU applied once, AFTER pooling (bias is per-channel constant in
    # each window and ReLU is monotone, so both commute with max).
    pooled = jnp.maximum(pooled + cb_ref[...], 0.0)               # (24, 384)

    # ---- flatten: yp from sublanes to lanes via 12 lane-aligned bf16 stores --
    for yp in range(H_POOL):
        flat_ref[:, yp * HALF:(yp + 1) * HALF] = (
            pooled[yp * B:(yp + 1) * B, :].astype(jnp.bfloat16))

    # ---- fc1 (int8 -> bf16 widen, f32 acc, per-column dequant) + ReLU + fc2 --
    w1_copy.wait()
    w1b = w1_vmem[...].astype(jnp.bfloat16)            # exact: |q| <= 127
    h = jnp.dot(flat_ref[...], w1b, preferred_element_type=jnp.float32)
    h = jnp.maximum(h * s1_ref[...] + b1_ref[...], 0.0)
    o_ref[...] = (jnp.dot(h, w2_ref[...], preferred_element_type=jnp.float32)
                  + b2_ref[...])


@jax.jit
def cnn_forward(x_nchw, kp):
    # Tiny XLA glue (~13 KB): row-only im2col with both output-row parities
    # stacked along M and the 5 kh bands concatenated along K, cast to bf16.
    #   lhs[p*24 + yp*B + b, kh*28 + x_in] = x[b, 0, 2*yp + p + kh, x_in]
    x2 = x_nchw[:, 0]                                    # (B, 28, 28)
    p = jnp.arange(2)[:, None, None]
    yp = jnp.arange(H_POOL)[None, :, None]
    kh = jnp.arange(K)[None, None, :]
    ridx = 2 * yp + p + kh                               # (2, 12, 5), values 0..27
    g = jnp.take(x2, ridx, axis=1)                       # (B, 2, 12, 5, 28)
    lhs = jnp.transpose(g, (1, 2, 0, 3, 4)).reshape(M_ROWS, K_CONV)
    lhs = lhs.astype(jnp.bfloat16)                       # (48, 140)

    return pl.pallas_call(
        fused_cnn_kernel,
        out_shape=jax.ShapeDtypeStruct((B, N_CLS), jnp.float32),
        grid=(1,),
        in_specs=[
            _full_spec(lhs.shape),                 # row-im2col input
            _full_spec(kp["conv_m"].shape),        # banded conv weights
            _full_spec(kp["conv_b"].shape),        # conv bias (pooled layout)
            pl.BlockSpec(memory_space=pl.ANY),     # w1q stays in HBM; streamed manually
            _full_spec(kp["s1"].shape),
            _full_spec(kp["b1"].shape),
            _full_spec(kp["w2"].shape),
            _full_spec(kp["b2"].shape),
        ],
        out_specs=_full_spec((B, N_CLS)),
        scratch_shapes=[
            pltpu.VMEM((FLAT, HID), jnp.int8),     # w1q landing buffer
            pltpu.SemaphoreType.DMA(()),           # w1q copy completion
            pltpu.VMEM((B, FLAT), jnp.bfloat16),   # flattened activations (bf16)
        ],
        compiler_params=pltpu.CompilerParams(dimension_semantics=("arbitrary",)),
    )(lhs, kp["conv_m"], kp["conv_b"], kp["w1q"], kp["s1"], kp["b1"],
      kp["w2"], kp["b2"])


# -----------------------------------------------------------------------------
# Host-side weight re-layout / quantization (one-time, zero runtime cost)
# -----------------------------------------------------------------------------
def build_conv_banded(conv_w):
    """conv_w: (32,1,5,5) OIHW -> (140, 768) banded matrix.

    M[kh*28 + x_in, px*384 + xp*32 + co] = conv_w[co,0,kh, x_in-(2*xp+px)]
    whenever 0 <= x_in - x_out < 5, else 0.
    """
    w = np.asarray(conv_w)[:, 0]                       # (32, 5, 5)
    m = np.zeros((K, W_IN, 2, W_POOL, C_OUT), np.float32)
    for kh in range(K):
        for px in range(2):
            for xp in range(W_POOL):
                x_out = 2 * xp + px
                for kw in range(K):
                    m[kh, x_out + kw, px, xp, :] = w[:, kh, kw]
    return jnp.asarray(m.reshape(K_CONV, COLS), dtype=jnp.bfloat16)


def build_w1_int8(fc1_w):
    """fc1_w: (128, 4608), PyTorch flat index co*144 + yp*12 + xp.

    Returns (q, s): q int8 (4608,128) with row = yp*384 + xp*32 + co (kernel
    flat order, absorbing PyTorch's view(-1,4608) + transpose), and per-output-
    column f32 scales s (1,128) such that w ~= q * s.
    """
    w = fc1_w.reshape(HID, C_OUT, H_POOL, W_POOL)      # (j, co, yp, xp)
    w = jnp.transpose(w, (2, 3, 1, 0)).reshape(FLAT, HID)
    s = jnp.maximum(jnp.max(jnp.abs(w), axis=0), 1e-12) / 127.0
    q = jnp.clip(jnp.round(w / s), -127.0, 127.0).astype(jnp.int8)
    return q, s.reshape(1, HID).astype(jnp.float32)


def init_params(key):
    ks = jax.random.split(key, 6)
    pt = {
        "conv_w": 0.10 * jax.random.normal(ks[0], (C_OUT, C_IN, K, K), jnp.float32),
        "conv_b": 0.10 * jax.random.normal(ks[1], (C_OUT,), jnp.float32),
        "fc1_w": 0.02 * jax.random.normal(ks[2], (HID, FLAT), jnp.float32),
        "fc1_b": 0.02 * jax.random.normal(ks[3], (HID,), jnp.float32),
        "fc2_w": 0.05 * jax.random.normal(ks[4], (N_CLS, HID), jnp.float32),
        "fc2_b": 0.05 * jax.random.normal(ks[5], (N_CLS,), jnp.float32),
    }
    w1q, s1 = build_w1_int8(pt["fc1_w"])
    kernel_params = {
        "conv_m": build_conv_banded(pt["conv_w"]),                    # (140,768) bf16
        "conv_b": jnp.tile(pt["conv_b"], W_POOL).reshape(1, HALF),    # (1,384) f32
        "w1q": w1q,                                                   # (4608,128) int8
        "s1": s1,                                                     # (1,128) f32
        "b1": pt["fc1_b"].reshape(1, HID),
        "w2": pt["fc2_w"].T,                                          # (128,10)
        "b2": pt["fc2_b"].reshape(1, N_CLS),
    }
    return pt, kernel_params


def reference_forward(x, pt):
    """Pure-JAX replica of the PyTorch forward (for verification)."""
    conv = lax.conv_general_dilated(x, pt["conv_w"], (1, 1), "VALID",
                                    dimension_numbers=("NCHW", "OIHW", "NCHW"))
    conv = jnp.maximum(conv + pt["conv_b"].reshape(1, C_OUT, 1, 1), 0.0)
    pooled = lax.reduce_window(conv, -jnp.inf, lax.max,
                               (1, 1, 2, 2), (1, 1, 2, 2), "VALID")
    flat = pooled.reshape(x.shape[0], -1)
    h = jnp.maximum(flat @ pt["fc1_w"].T + pt["fc1_b"], 0.0)
    return h @ pt["fc2_w"].T + pt["fc2_b"]


if __name__ == "__main__":
    key = jax.random.PRNGKey(0)
    k_x, k_p = jax.random.split(key)
    x = jax.random.normal(k_x, (B, C_IN, H_IN, W_IN), jnp.float32)
    pt_params, kparams = init_params(k_p)

    out = jax.block_until_ready(cnn_forward(x, kparams))
    assert out.shape == (B, N_CLS) and out.dtype == jnp.float32

    # (a) tight check vs a reference using the SAME int8-dequantized fc1 weight:
    #     validates the kernel math itself (only bf16-level rounding remains).
    w1_deq = kparams["w1q"].astype(jnp.float32) * kparams["s1"]       # (4608,128)
    fc1_w_deq = jnp.transpose(
        w1_deq.reshape(H_POOL, W_POOL, C_OUT, HID), (3, 2, 0, 1)).reshape(HID, FLAT)
    ref_q = reference_forward(x, dict(pt_params, fc1_w=fc1_w_deq))
    err_q = float(jnp.max(jnp.abs(out - ref_q)))
    assert err_q < 1e-2, f"kernel vs dequantized-w1 reference: {err_q}"

    # (b) looser check vs the exact f32 PyTorch-equivalent forward
    #     (budget: bf16 conv/activations ~2e-3 + int8 per-column fc1 quant ~1e-2).
    ref = reference_forward(x, pt_params)
    err = float(jnp.max(jnp.abs(out - ref)))
    assert err < 3e-2, f"kernel vs exact reference: {err}"
    print("KERNEL_OK")
</pallas_src>

<mosaic_0001>
module attributes {stable_mosaic.version = 11 : i64} {
  func.func @fused_cnn_kernel(%arg0: i32, %arg1: memref<48x140xbf16, #tpu.memory_space<vmem>>, %arg2: memref<140x768xbf16, #tpu.memory_space<vmem>>, %arg3: memref<1x384xf32, #tpu.memory_space<vmem>>, %arg4: memref<4608x128xi8, #tpu.memory_space<any>>, %arg5: memref<1x128xf32, #tpu.memory_space<vmem>>, %arg6: memref<1x128xf32, #tpu.memory_space<vmem>>, %arg7: memref<128x10xf32, #tpu.memory_space<vmem>>, %arg8: memref<1x10xf32, #tpu.memory_space<vmem>>, %arg9: memref<2x10xf32, #tpu.memory_space<vmem>>, %arg10: memref<4608x128xi8, #tpu.memory_space<vmem>>, %arg11: memref<!tpu.dma_semaphore, #tpu.memory_space<semaphore_mem>>, %arg12: memref<2x4608xbf16, #tpu.memory_space<vmem>>) attributes {dimension_semantics = [#tpu.dimension_semantics<arbitrary>], iteration_bounds = array<i64: 1>, scalar_prefetch = 0 : i64, scratch_operands = 3 : i64, tpu.core_type = #tpu.core_type<tc>, window_params = [{pipeline_mode = #tpu.pipeline_mode<synchronous>, transform_indices = @transform_0, window_bounds = array<i64: 48, 140>}, {pipeline_mode = #tpu.pipeline_mode<synchronous>, transform_indices = @transform_1, window_bounds = array<i64: 140, 768>}, {pipeline_mode = #tpu.pipeline_mode<synchronous>, transform_indices = @transform_2, window_bounds = array<i64: 1, 384>}, {}, {pipeline_mode = #tpu.pipeline_mode<synchronous>, transform_indices = @transform_4, window_bounds = array<i64: 1, 128>}, {pipeline_mode = #tpu.pipeline_mode<synchronous>, transform_indices = @transform_5, window_bounds = array<i64: 1, 128>}, {pipeline_mode = #tpu.pipeline_mode<synchronous>, transform_indices = @transform_6, window_bounds = array<i64: 128, 10>}, {pipeline_mode = #tpu.pipeline_mode<synchronous>, transform_indices = @transform_7, window_bounds = array<i64: 1, 10>}, {pipeline_mode = #tpu.pipeline_mode<synchronous>, transform_indices = @transform_8, window_bounds = array<i64: 2, 10>}]} {
    tpu.enqueue_dma source(%arg4 : memref<4608x128xi8, #tpu.memory_space<any>>) target(%arg10 : memref<4608x128xi8, #tpu.memory_space<vmem>>) target_semaphore(%arg11 : memref<!tpu.dma_semaphore, #tpu.memory_space<semaphore_mem>>)
    %c0 = arith.constant 0 : index
    %c0_0 = arith.constant 0 : index
    %0 = vector.load %arg1[%c0, %c0_0] : memref<48x140xbf16, #tpu.memory_space<vmem>>, vector<48x140xbf16>
    %c0_1 = arith.constant 0 : index
    %c0_2 = arith.constant 0 : index
    %1 = vector.load %arg2[%c0_1, %c0_2] : memref<140x768xbf16, #tpu.memory_space<vmem>>, vector<140x768xbf16>
    %cst = arith.constant dense<0.000000e+00> : vector<48x768xf32>
    %2 = tpu.matmul %0, %1, %cst {dimension_numbers = #tpu.dot_dimension_numbers<[1], [0], [0], [1], [0, 0, 1, 1], [], []>} : vector<48x140xbf16>, vector<140x768xbf16>, vector<48x768xf32> -> vector<48x768xf32>
    %3 = vector.extract_strided_slice %2 {offsets = [0, 0], sizes = [24, 768], strides = [1, 1]} : vector<48x768xf32> to vector<24x768xf32>
    %4 = vector.extract_strided_slice %2 {offsets = [24, 0], sizes = [24, 768], strides = [1, 1]} : vector<48x768xf32> to vector<24x768xf32>
    %5 = arith.maximumf %3, %4 : vector<24x768xf32>
    %6 = vector.extract_strided_slice %5 {offsets = [0, 0], sizes = [24, 384], strides = [1, 1]} : vector<24x768xf32> to vector<24x384xf32>
    %7 = vector.extract_strided_slice %5 {offsets = [0, 384], sizes = [24, 384], strides = [1, 1]} : vector<24x768xf32> to vector<24x384xf32>
    %8 = arith.maximumf %6, %7 : vector<24x384xf32>
    %c0_3 = arith.constant 0 : index
    %c0_4 = arith.constant 0 : index
    %9 = vector.load %arg3[%c0_3, %c0_4] : memref<1x384xf32, #tpu.memory_space<vmem>>, vector<1x384xf32>
    %10 = vector.broadcast %9 : vector<1x384xf32> to vector<24x384xf32>
    %11 = arith.addf %8, %10 : vector<24x384xf32>
    %cst_5 = arith.constant 0.000000e+00 : f32
    %12 = vector.broadcast %cst_5 : f32 to vector<24x384xf32>
    %13 = arith.maximumf %11, %12 : vector<24x384xf32>
    %14 = vector.extract_strided_slice %13 {offsets = [0, 0], sizes = [2, 384], strides = [1, 1]} : vector<24x384xf32> to vector<2x384xf32>
    %15 = arith.truncf %14 : vector<2x384xf32> to vector<2x384xbf16>
    %c0_6 = arith.constant 0 : index
    %c0_7 = arith.constant 0 : index
    %16 = vector.load %arg12[%c0_6, %c0_7] : memref<2x4608xbf16, #tpu.memory_space<vmem>>, vector<2x384xbf16>
    tpu.vector_store %arg12[%c0_6, %c0_7], %15 {strides = array<i32>} : memref<2x4608xbf16, #tpu.memory_space<vmem>>, vector<2x384xbf16>,
    %17 = vector.extract_strided_slice %13 {offsets = [2, 0], sizes = [2, 384], strides = [1, 1]} : vector<24x384xf32> to vector<2x384xf32>
    %18 = arith.truncf %17 : vector<2x384xf32> to vector<2x384xbf16>
    %c0_8 = arith.constant 0 : index
    %c384 = arith.constant 384 : index
    %19 = vector.load %arg12[%c0_8, %c384] : memref<2x4608xbf16, #tpu.memory_space<vmem>>, vector<2x384xbf16>
    tpu.vector_store %arg12[%c0_8, %c384], %18 {strides = array<i32>} : memref<2x4608xbf16, #tpu.memory_space<vmem>>, vector<2x384xbf16>,
    %20 = vector.extract_strided_slice %13 {offsets = [4, 0], sizes = [2, 384], strides = [1, 1]} : vector<24x384xf32> to vector<2x384xf32>
    %21 = arith.truncf %20 : vector<2x384xf32> to vector<2x384xbf16>
    %c0_9 = arith.constant 0 : index
    %c768 = arith.constant 768 : index
    %22 = vector.load %arg12[%c0_9, %c768] : memref<2x4608xbf16, #tpu.memory_space<vmem>>, vector<2x384xbf16>
    tpu.vector_store %arg12[%c0_9, %c768], %21 {strides = array<i32>} : memref<2x4608xbf16, #tpu.memory_space<vmem>>, vector<2x384xbf16>,
    %23 = vector.extract_strided_slice %13 {offsets = [6, 0], sizes = [2, 384], strides = [1, 1]} : vector<24x384xf32> to vector<2x384xf32>
    %24 = arith.truncf %23 : vector<2x384xf32> to vector<2x384xbf16>
    %c0_10 = arith.constant 0 : index
    %c1152 = arith.constant 1152 : index
    %25 = vector.load %arg12[%c0_10, %c1152] : memref<2x4608xbf16, #tpu.memory_space<vmem>>, vector<2x384xbf16>
    tpu.vector_store %arg12[%c0_10, %c1152], %24 {strides = array<i32>} : memref<2x4608xbf16, #tpu.memory_space<vmem>>, vector<2x384xbf16>,
    %26 = vector.extract_strided_slice %13 {offsets = [8, 0], sizes = [2, 384], strides = [1, 1]} : vector<24x384xf32> to vector<2x384xf32>
    %27 = arith.truncf %26 : vector<2x384xf32> to vector<2x384xbf16>
    %c0_11 = arith.constant 0 : index
    %c1536 = arith.constant 1536 : index
    %28 = vector.load %arg12[%c0_11, %c1536] : memref<2x4608xbf16, #tpu.memory_space<vmem>>, vector<2x384xbf16>
    tpu.vector_store %arg12[%c0_11, %c1536], %27 {strides = array<i32>} : memref<2x4608xbf16, #tpu.memory_space<vmem>>, vector<2x384xbf16>,
    %29 = vector.extract_strided_slice %13 {offsets = [10, 0], sizes = [2, 384], strides = [1, 1]} : vector<24x384xf32> to vector<2x384xf32>
    %30 = arith.truncf %29 : vector<2x384xf32> to vector<2x384xbf16>
    %c0_12 = arith.constant 0 : index
    %c1920 = arith.constant 1920 : index
    %31 = vector.load %arg12[%c0_12, %c1920] : memref<2x4608xbf16, #tpu.memory_space<vmem>>, vector<2x384xbf16>
    tpu.vector_store %arg12[%c0_12, %c1920], %30 {strides = array<i32>} : memref<2x4608xbf16, #tpu.memory_space<vmem>>, vector<2x384xbf16>,
    %32 = vector.extract_strided_slice %13 {offsets = [12, 0], sizes = [2, 384], strides = [1, 1]} : vector<24x384xf32> to vector<2x384xf32>
    %33 = arith.truncf %32 : vector<2x384xf32> to vector<2x384xbf16>
    %c0_13 = arith.constant 0 : index
    %c2304 = arith.constant 2304 : index
    %34 = vector.load %arg12[%c0_13, %c2304] : memref<2x4608xbf16, #tpu.memory_space<vmem>>, vector<2x384xbf16>
    tpu.vector_store %arg12[%c0_13, %c2304], %33 {strides = array<i32>} : memref<2x4608xbf16, #tpu.memory_space<vmem>>, vector<2x384xbf16>,
    %35 = vector.extract_strided_slice %13 {offsets = [14, 0], sizes = [2, 384], strides = [1, 1]} : vector<24x384xf32> to vector<2x384xf32>
    %36 = arith.truncf %35 : vector<2x384xf32> to vector<2x384xbf16>
    %c0_14 = arith.constant 0 : index
    %c2688 = arith.constant 2688 : index
    %37 = vector.load %arg12[%c0_14, %c2688] : memref<2x4608xbf16, #tpu.memory_space<vmem>>, vector<2x384xbf16>
    tpu.vector_store %arg12[%c0_14, %c2688], %36 {strides = array<i32>} : memref<2x4608xbf16, #tpu.memory_space<vmem>>, vector<2x384xbf16>,
    %38 = vector.extract_strided_slice %13 {offsets = [16, 0], sizes = [2, 384], strides = [1, 1]} : vector<24x384xf32> to vector<2x384xf32>
    %39 = arith.truncf %38 : vector<2x384xf32> to vector<2x384xbf16>
    %c0_15 = arith.constant 0 : index
    %c3072 = arith.constant 3072 : index
    %40 = vector.load %arg12[%c0_15, %c3072] : memref<2x4608xbf16, #tpu.memory_space<vmem>>, vector<2x384xbf16>
    tpu.vector_store %arg12[%c0_15, %c3072], %39 {strides = array<i32>} : memref<2x4608xbf16, #tpu.memory_space<vmem>>, vector<2x384xbf16>,
    %41 = vector.extract_strided_slice %13 {offsets = [18, 0], sizes = [2, 384], strides = [1, 1]} : vector<24x384xf32> to vector<2x384xf32>
    %42 = arith.truncf %41 : vector<2x384xf32> to vector<2x384xbf16>
    %c0_16 = arith.constant 0 : index
    %c3456 = arith.constant 3456 : index
    %43 = vector.load %arg12[%c0_16, %c3456] : memref<2x4608xbf16, #tpu.memory_space<vmem>>, vector<2x384xbf16>
    tpu.vector_store %arg12[%c0_16, %c3456], %42 {strides = array<i32>} : memref<2x4608xbf16, #tpu.memory_space<vmem>>, vector<2x384xbf16>,
    %44 = vector.extract_strided_slice %13 {offsets = [20, 0], sizes = [2, 384], strides = [1, 1]} : vector<24x384xf32> to vector<2x384xf32>
    %45 = arith.truncf %44 : vector<2x384xf32> to vector<2x384xbf16>
    %c0_17 = arith.constant 0 : index
    %c3840 = arith.constant 3840 : index
    %46 = vector.load %arg12[%c0_17, %c3840] : memref<2x4608xbf16, #tpu.memory_space<vmem>>, vector<2x384xbf16>
    tpu.vector_store %arg12[%c0_17, %c3840], %45 {strides = array<i32>} : memref<2x4608xbf16, #tpu.memory_space<vmem>>, vector<2x384xbf16>,
    %47 = vector.extract_strided_slice %13 {offsets = [22, 0], sizes = [2, 384], strides = [1, 1]} : vector<24x384xf32> to vector<2x384xf32>
    %48 = arith.truncf %47 : vector<2x384xf32> to vector<2x384xbf16>
    %c0_18 = arith.constant 0 : index
    %c4224 = arith.constant 4224 : index
    %49 = vector.load %arg12[%c0_18, %c4224] : memref<2x4608xbf16, #tpu.memory_space<vmem>>, vector<2x384xbf16>
    tpu.vector_store %arg12[%c0_18, %c4224], %48 {strides = array<i32>} : memref<2x4608xbf16, #tpu.memory_space<vmem>>, vector<2x384xbf16>,
    tpu.wait_dma2 semaphore(%arg11 : memref<!tpu.dma_semaphore, #tpu.memory_space<semaphore_mem>>) src(%arg4 : memref<4608x128xi8, #tpu.memory_space<any>>) dst(%arg10 : memref<4608x128xi8, #tpu.memory_space<vmem>>)
    %c0_19 = arith.constant 0 : index
    %c0_20 = arith.constant 0 : index
    %50 = vector.load %arg10[%c0_19, %c0_20] : memref<4608x128xi8, #tpu.memory_space<vmem>>, vector<4608x128xi8>
    %51 = arith.sitofp %50 : vector<4608x128xi8> to vector<4608x128xbf16>
    %c0_21 = arith.constant 0 : index
    %c0_22 = arith.constant 0 : index
    %52 = vector.load %arg12[%c0_21, %c0_22] : memref<2x4608xbf16, #tpu.memory_space<vmem>>, vector<2x4608xbf16>
    %cst_23 = arith.constant dense<0.000000e+00> : vector<2x128xf32>
    %53 = tpu.matmul %52, %51, %cst_23 {dimension_numbers = #tpu.dot_dimension_numbers<[1], [0], [0], [1], [0, 0, 1, 1], [], []>} : vector<2x4608xbf16>, vector<4608x128xbf16>, vector<2x128xf32> -> vector<2x128xf32>
    %c0_24 = arith.constant 0 : index
    %c0_25 = arith.constant 0 : index
    %54 = vector.load %arg5[%c0_24, %c0_25] : memref<1x128xf32, #tpu.memory_space<vmem>>, vector<1x128xf32>
    %55 = vector.broadcast %54 : vector<1x128xf32> to vector<2x128xf32>
    %56 = arith.mulf %53, %55 : vector<2x128xf32>
    %c0_26 = arith.constant 0 : index
    %c0_27 = arith.constant 0 : index
    %57 = vector.load %arg6[%c0_26, %c0_27] : memref<1x128xf32, #tpu.memory_space<vmem>>, vector<1x128xf32>
    %58 = vector.broadcast %57 : vector<1x128xf32> to vector<2x128xf32>
    %59 = arith.addf %56, %58 : vector<2x128xf32>
    %cst_28 = arith.constant 0.000000e+00 : f32
    %60 = vector.broadcast %cst_28 : f32 to vector<2x128xf32>
    %61 = arith.maximumf %59, %60 : vector<2x128xf32>
    %c0_29 = arith.constant 0 : index
    %c0_30 = arith.constant 0 : index
    %62 = vector.load %arg7[%c0_29, %c0_30] : memref<128x10xf32, #tpu.memory_space<vmem>>, vector<128x10xf32>
    %cst_31 = arith.constant dense<0.000000e+00> : vector<2x10xf32>
    %63 = tpu.matmul %61, %62, %cst_31 {dimension_numbers = #tpu.dot_dimension_numbers<[1], [0], [0], [1], [0, 0, 1, 1], [], []>} : vector<2x128xf32>, vector<128x10xf32>, vector<2x10xf32> -> vector<2x10xf32>
    %c0_32 = arith.constant 0 : index
    %c0_33 = arith.constant 0 : index
    %64 = vector.load %arg8[%c0_32, %c0_33] : memref<1x10xf32, #tpu.memory_space<vmem>>, vector<1x10xf32>
    %65 = vector.broadcast %64 : vector<1x10xf32> to vector<2x10xf32>
    %66 = arith.addf %63, %65 : vector<2x10xf32>
    %c0_34 = arith.constant 0 : index
    %c0_35 = arith.constant 0 : index
    %67 = vector.load %arg9[%c0_34, %c0_35] : memref<2x10xf32, #tpu.memory_space<vmem>>, vector<2x10xf32>
    tpu.vector_store %arg9[%c0_34, %c0_35], %66 {strides = array<i32>} : memref<2x10xf32, #tpu.memory_space<vmem>>, vector<2x10xf32>,
    return
  }
  func.func @transform_0(%arg0: i32) -> (i32, i32) {
    %c0_i32 = arith.constant 0 : i32
    %c0_i32_0 = arith.constant 0 : i32
    %c0_i32_1 = arith.constant 0 : i32
    return %c0_i32, %c0_i32_0 : i32, i32
  }
  func.func @transform_1(%arg0: i32) -> (i32, i32) {
    %c0_i32 = arith.constant 0 : i32
    %c0_i32_0 = arith.constant 0 : i32
    %c0_i32_1 = arith.constant 0 : i32
    return %c0_i32, %c0_i32_0 : i32, i32
  }
  func.func @transform_2(%arg0: i32) -> (i32, i32) {
    %c0_i32 = arith.constant 0 : i32
    %c0_i32_0 = arith.constant 0 : i32
    %c0_i32_1 = arith.constant 0 : i32
    return %c0_i32, %c0_i32_0 : i32, i32
  }
  func.func @transform_4(%arg0: i32) -> (i32, i32) {
    %c0_i32 = arith.constant 0 : i32
    %c0_i32_0 = arith.constant 0 : i32
    %c0_i32_1 = arith.constant 0 : i32
    return %c0_i32, %c0_i32_0 : i32, i32
  }
  func.func @transform_5(%arg0: i32) -> (i32, i32) {
    %c0_i32 = arith.constant 0 : i32
    %c0_i32_0 = arith.constant 0 : i32
    %c0_i32_1 = arith.constant 0 : i32
    return %c0_i32, %c0_i32_0 : i32, i32
  }
  func.func @transform_6(%arg0: i32) -> (i32, i32) {
    %c0_i32 = arith.constant 0 : i32
    %c0_i32_0 = arith.constant 0 : i32
    %c0_i32_1 = arith.constant 0 : i32
    return %c0_i32, %c0_i32_0 : i32, i32
  }
  func.func @transform_7(%arg0: i32) -> (i32, i32) {
    %c0_i32 = arith.constant 0 : i32
    %c0_i32_0 = arith.constant 0 : i32
    %c0_i32_1 = arith.constant 0 : i32
    return %c0_i32, %c0_i32_0 : i32, i32
  }
  func.func @transform_8(%arg0: i32) -> (i32, i32) {
    %c0_i32 = arith.constant 0 : i32
    %c0_i32_0 = arith.constant 0 : i32
    %c0_i32_1 = arith.constant 0 : i32
    return %c0_i32, %c0_i32_0 : i32, i32
  }
}

</mosaic_0001>

<bundles_post_ra>
// kernel: cnn_forward.1
= control target key start
LH: loop header
LB: loop body
LE: loop exit
PB: predicated region body
PF: predicated region fallthrough
CT: control target
= control target key end

     0   :  { %13 = vsyncpa [#allocation6], 0  ;;  %s4789_s0 = inlined_call_operand.vmem [shape: bf16[48,140], index: 0, kind: input, shape index: {}]   ;;  %s4790_s1 = inlined_call_operand.hbm [shape: bf16[140,768], index: 1, kind: input, shape index: {}]   ;;  %s4791_s2 = inlined_call_operand.vmem [shape: f32[1,384], index: 2, kind: input, shape index: {}]   ;;  %s4792_s3 = inlined_call_operand.vmem [shape: s8[4608,128], index: 3, kind: input, shape index: {}]   ;;  %s4793_s4 = inlined_call_operand.vmem [shape: f32[1,128], index: 4, kind: input, shape index: {}]   ;;  %s4794_s5 = inlined_call_operand.vmem [shape: f32[1,128], index: 5, kind: input, shape index: {}]   ;;  %s4795_s6 = inlined_call_operand.vmem [shape: f32[128,10], index: 6, kind: input, shape index: {}]   ;;  %s4796_s7 = inlined_call_operand.vmem [shape: f32[1,10], index: 7, kind: input, shape index: {}]   ;;  %s4797_s8 = inlined_call_operand.hbm [shape: f32[2,10], index: 8, kind: output, shape index: {}]  }
   0x1   :  { %14 = vsyncpa [#allocation7], 0  ;;  %s3416_s27 = smov [#allocation5]   ;;  %s3366_s9 = scalar_lea.hbm %s4790_s1, 6912 }
   0x2   :  { %s22_s28 = sshll.u32 %s3416_s27, 4  ;;  %p3367_p0 = scmp.ne.s32.totalorder %s4790_s1, %s3366_s9  ;;  %s23_s28 = int_to_ptr.vmem [resolvable:$true] %s22_s28 }
   0x3   :  { %p3370_p1 = scmp.lt.u32.totalorder %s3366_s9, %s4790_s1 }
   0x5   :  { %p3372_p2 = pnand %p3370_p1, %p3367_p0 }
   0x7   :  { %3375 = shalt.err (!%p3372_p2)
}
   0x8   :  { %s3376_s14 = scalar_lea.vmem %s23_s28, 6912  ;;  %p3381_p4 = scmp.lt.s32.totalorder %s23_s28, %s23_s28 }
   0x9   :  { %p3377_p3 = scmp.ne.s32.totalorder %s23_s28, %s3376_s14  ;;  %p3382_p5 = scmp.lt.s32.totalorder %s3376_s14, %s3376_s14 }
   0xb   :  { %p3383_p6 = por %p3382_p5, %p3381_p4 }
   0xd   :  { %p3384_p7 = pnand %p3383_p6, %p3377_p3 }
   0xf   :  { %3387 = shalt.err (!%p3384_p7)
}
  0x10   :  { %s3417_s15 = smov 384   ;;  %s3418_s16 = smov 24  }
  0x11   :  { %28 = dma.hbm_to_vmem [thread:$0]  %s4790_s1, 6912, %s23_s28, [#allocation6], %s3417_s15, %s3417_s15, %s3418_s16  }
  0x12   :  { %3410 = dma.done.wait [#allocation6], 6912  }
  0x13   :  { %3411 = vsyncadd [#allocation6], 4294960384  ;;  %v3484_v0 = vld [vmem:[%s4792_s3] sm:$0xff]  ;;  %v3489_v1 = vld [vmem:[%s4792_s3 + $0x8] sm:$0xff] }
  0x14   :  { %v3494_v2 = vld [vmem:[%s4792_s3 + $0x10] sm:$0xff]  ;;  %v3499_v3 = vld [vmem:[%s4792_s3 + $0x18] sm:$0xff]  ;;  %v3504_v4 = vld [vmem:[%s4792_s3 + $0x20] sm:$0xff] }
  0x15   :  { %v3509_v5 = vld [vmem:[%s4792_s3 + $0x28] sm:$0xff]  ;;  %v3514_v6 = vld [vmem:[%s4792_s3 + $0x30] sm:$0xff]  ;;  %v3519_v7 = vld [vmem:[%s4792_s3 + $0x38] sm:$0xff] }
  0x16   :  { %v3524_v8 = vld [vmem:[%s4792_s3 + $0x40] sm:$0xff]  ;;  %v3529_v9 = vld [vmem:[%s4792_s3 + $0x48] sm:$0xff]  ;;  %v3534_v10 = vld [vmem:[%s4792_s3 + $0x50] sm:$0xff] }
  0x17   :  { %4919 = vst [vmem:[#allocation13_spill] sm:$0xff] %v3534_v10  ;;  %v3539_v11 = vld [vmem:[%s4792_s3 + $0x58] sm:$0xff]  ;;  %v3544_v12 = vld [vmem:[%s4792_s3 + $0x60] sm:$0xff]  ;;  %v3549_v13 = vld [vmem:[%s4792_s3 + $0x68] sm:$0xff] }
  0x18   :  { %4920 = vst [vmem:[#allocation14_spill] sm:$0xff] %v3539_v11  ;;  %v3554_v14 = vld [vmem:[%s4792_s3 + $0x70] sm:$0xff]  ;;  %v3559_v15 = vld [vmem:[%s4792_s3 + $0x78] sm:$0xff]  ;;  %v3564_v16 = vld [vmem:[%s4792_s3 + $0x80] sm:$0xff] }
  0x19   :  { %4921 = vst [vmem:[#allocation15_spill] sm:$0xff] %v3554_v14  ;;  %4922 = vst [vmem:[#allocation16_spill] sm:$0xff] %v3559_v15  ;;  %v3569_v17 = vld [vmem:[%s4792_s3 + $0x88] sm:$0xff]  ;;  %v3574_v18 = vld [vmem:[%s4792_s3 + $0x90] sm:$0xff] }
  0x1a   :  { %v3579_v19 = vld [vmem:[%s4792_s3 + $0x98] sm:$0xff]  ;;  %v3584_v20 = vld [vmem:[%s4792_s3 + $0xa0] sm:$0xff]  ;;  %v3589_v21 = vld [vmem:[%s4792_s3 + $0xa8] sm:$0xff] }
  0x1b   :  { %v3594_v22 = vld [vmem:[%s4792_s3 + $0xb0] sm:$0xff]  ;;  %v3599_v23 = vld [vmem:[%s4792_s3 + $0xb8] sm:$0xff]  ;;  %v3604_v24 = vld [vmem:[%s4792_s3 + $0xc0] sm:$0xff] }
  0x1c   :  { %4923 = vst [vmem:[#allocation17_spill] sm:$0xff] %v3604_v24  ;;  %v3609_v25 = vld [vmem:[%s4792_s3 + $0xc8] sm:$0xff]  ;;  %v3614_v26 = vld [vmem:[%s4792_s3 + $0xd0] sm:$0xff]  ;;  %v3619_v27 = vld [vmem:[%s4792_s3 + $0xd8] sm:$0xff] }
  0x1d   :  { %4924 = vst [vmem:[#allocation18_spill] sm:$0xff] %v3609_v25  ;;  %4925 = vst [vmem:[#allocation19_spill] sm:$0xff] %v3614_v26  ;;  %v3624_v28 = vld [vmem:[%s4792_s3 + $0xe0] sm:$0xff]  ;;  %v3629_v29 = vld [vmem:[%s4792_s3 + $0xe8] sm:$0xff] }
  0x1e   :  { %4926 = vst [vmem:[#allocation20_spill] sm:$0xff] %v3619_v27  ;;  %4927 = vst [vmem:[#allocation21_spill] sm:$0xff] %v3624_v28  ;;  %v3634_v30 = vld [vmem:[%s4792_s3 + $0xf0] sm:$0xff]  ;;  %v3639_v31 = vld [vmem:[%s4792_s3 + $0xf8] sm:$0xff] }
  0x1f   :  { %4928 = vst [vmem:[#allocation22_spill] sm:$0xff] %v3629_v29  ;;  %4929 = vst [vmem:[#allocation23_spill] sm:$0xff] %v3634_v30  ;;  %v3644_v32 = vld [vmem:[%s4792_s3 + $0x100] sm:$0xff]  ;;  %v3649_v33 = vld [vmem:[%s4792_s3 + $0x108] sm:$0xff] }
  0x20   :  { %4930 = vst [vmem:[#allocation24_spill] sm:$0xff] %v3639_v31  ;;  %4931 = vst [vmem:[#allocation25_spill] sm:$0xff] %v3649_v33  ;;  %v3654_v34 = vld [vmem:[%s4792_s3 + $0x110] sm:$0xff]  ;;  %v3659_v35 = vld [vmem:[%s4792_s3 + $0x118] sm:$0xff] }
  0x21   :  { %4932 = vst [vmem:[#allocation26_spill] sm:$0xff] %v3654_v34  ;;  %4933 = vst [vmem:[#allocation27_spill] sm:$0xff] %v3659_v35  ;;  %v3664_v36 = vld [vmem:[%s4792_s3 + $0x120] sm:$0xff]  ;;  %v3669_v37 = vld [vmem:[%s4792_s3 + $0x128] sm:$0xff] }
  0x22   :  { %v3674_v38 = vld [vmem:[%s4792_s3 + $0x130] sm:$0xff]  ;;  %v3679_v39 = vld [vmem:[%s4792_s3 + $0x138] sm:$0xff]  ;;  %v3684_v40 = vld [vmem:[%s4792_s3 + $0x140] sm:$0xff] }
  0x23   :  { %4934 = vst [vmem:[#allocation28_spill] sm:$0xff] %v3674_v38  ;;  %4935 = vst [vmem:[#allocation29_spill] sm:$0xff] %v3679_v39  ;;  %v3689_v41 = vld [vmem:[%s4792_s3 + $0x148] sm:$0xff]  ;;  %v3694_v42 = vld [vmem:[%s4792_s3 + $0x150] sm:$0xff] }
  0x24   :  { %4936 = vst [vmem:[#allocation30_spill] sm:$0xff] %v3684_v40  ;;  %4937 = vst [vmem:[#allocation31_spill] sm:$0xff] %v3689_v41  ;;  %v3699_v43 = vld [vmem:[%s4792_s3 + $0x158] sm:$0xff]  ;;  %v3704_v44 = vld [vmem:[%s4792_s3 + $0x160] sm:$0xff] }
  0x25   :  { %4938 = vst [vmem:[#allocation32_spill] sm:$0xff] %v3694_v42  ;;  %4939 = vst [vmem:[#allocation33_spill] sm:$0xff] %v3699_v43  ;;  %v3709_v45 = vld [vmem:[%s4792_s3 + $0x168] sm:$0xff]  ;;  %v3714_v46 = vld [vmem:[%s4792_s3 + $0x170] sm:$0xff] }
  0x26   :  { %4940 = vst [vmem:[#allocation34_spill] sm:$0xff] %v3704_v44  ;;  %4941 = vst [vmem:[#allocation35_spill] sm:$0xff] %v3709_v45  ;;  %v3719_v47 = vld [vmem:[%s4792_s3 + $0x178] sm:$0xff]  ;;  %v3724_v48 = vld [vmem:[%s4792_s3 + $0x180] sm:$0xff] }
  0x27   :  { %4942 = vst [vmem:[#allocation36_spill] sm:$0xff] %v3714_v46  ;;  %4943 = vst [vmem:[#allocation37_spill] sm:$0xff] %v3719_v47  ;;  %v3729_v49 = vld [vmem:[%s4792_s3 + $0x188] sm:$0xff]  ;;  %v3734_v50 = vld [vmem:[%s4792_s3 + $0x190] sm:$0xff] }
  0x28   :  { %4944 = vst [vmem:[#allocation38_spill] sm:$0xff] %v3724_v48  ;;  %4945 = vst [vmem:[#allocation39_spill] sm:$0xff] %v3729_v49  ;;  %v3739_v51 = vld [vmem:[%s4792_s3 + $0x198] sm:$0xff]  ;;  %v3744_v52 = vld [vmem:[%s4792_s3 + $0x1a0] sm:$0xff] }
  0x29   :  { %4946 = vst [vmem:[#allocation40_spill] sm:$0xff] %v3734_v50  ;;  %4947 = vst [vmem:[#allocation41_spill] sm:$0xff] %v3739_v51  ;;  %v3749_v53 = vld [vmem:[%s4792_s3 + $0x1a8] sm:$0xff]  ;;  %v3754_v54 = vld [vmem:[%s4792_s3 + $0x1b0] sm:$0xff] }
  0x2a   :  { %4948 = vst [vmem:[#allocation42_spill] sm:$0xff] %v3744_v52  ;;  %4949 = vst [vmem:[#allocation43_spill] sm:$0xff] %v3749_v53  ;;  %v3759_v55 = vld [vmem:[%s4792_s3 + $0x1b8] sm:$0xff]  ;;  %v3764_v56 = vld [vmem:[%s4792_s3 + $0x1c0] sm:$0xff] }
  0x2b   :  { %4950 = vst [vmem:[#allocation44_spill] sm:$0xff] %v3754_v54  ;;  %4951 = vst [vmem:[#allocation45_spill] sm:$0xff] %v3759_v55  ;;  %v3769_v57 = vld [vmem:[%s4792_s3 + $0x1c8] sm:$0xff]  ;;  %v3774_v58 = vld [vmem:[%s4792_s3 + $0x1d0] sm:$0xff] }
  0x2c   :  { %4952 = vst [vmem:[#allocation46_spill] sm:$0xff] %v3764_v56  ;;  %4953 = vst [vmem:[#allocation47_spill] sm:$0xff] %v3769_v57  ;;  %v3779_v59 = vld [vmem:[%s4792_s3 + $0x1d8] sm:$0xff]  ;;  %v3784_v60 = vld [vmem:[%s4792_s3 + $0x1e0] sm:$0xff] }
  0x2d   :  { %4954 = vst [vmem:[#allocation48_spill] sm:$0xff] %v3774_v58  ;;  %4955 = vst [vmem:[#allocation49_spill] sm:$0xff] %v3779_v59  ;;  %v3789_v61 = vld [vmem:[%s4792_s3 + $0x1e8] sm:$0xff]  ;;  %v3794_v62 = vld [vmem:[%s4792_s3 + $0x1f0] sm:$0xff] }
  0x2e   :  { %4956 = vst [vmem:[#allocation50_spill] sm:$0xff] %v3784_v60  ;;  %4957 = vst [vmem:[#allocation51_spill] sm:$0xff] %v3789_v61  ;;  %v3799_v63 = vld [vmem:[%s4792_s3 + $0x1f8] sm:$0xff]  ;;  %v3804_v59 = vld [vmem:[%s4792_s3 + $0x200] sm:$0xff] }
  0x2f   :  { %4958 = vst [vmem:[#allocation52_spill] sm:$0xff] %v3794_v62  ;;  %4959 = vst [vmem:[#allocation53_spill] sm:$0xff] %v3799_v63  ;;  %v3809_v58 = vld [vmem:[%s4792_s3 + $0x208] sm:$0xff]  ;;  %v3814_v57 = vld [vmem:[%s4792_s3 + $0x210] sm:$0xff] }
  0x30   :  { %4960 = vst [vmem:[#allocation54_spill] sm:$0xff] %v3804_v59  ;;  %4961 = vst [vmem:[#allocation55_spill] sm:$0xff] %v3809_v58  ;;  %v3819_v62 = vld [vmem:[%s4792_s3 + $0x218] sm:$0xff]  ;;  %v3824_v63 = vld [vmem:[%s4792_s3 + $0x220] sm:$0xff] }
  0x31   :  { %4962 = vst [vmem:[#allocation56_spill] sm:$0xff] %v3814_v57  ;;  %4963 = vst [vmem:[#allocation57_spill] sm:$0xff] %v3819_v62  ;;  %v3829_v61 = vld [vmem:[%s4792_s3 + $0x228] sm:$0xff]  ;;  %v3834_v56 = vld [vmem:[%s4792_s3 + $0x230] sm:$0xff] }
  0x32   :  { %4964 = vst [vmem:[#allocation58_spill] sm:$0xff] %v3824_v63  ;;  %4965 = vst [vmem:[#allocation59_spill] sm:$0xff] %v3829_v61  ;;  %v3839_v60 = vld [vmem:[%s4792_s3 + $0x238] sm:$0xff]  ;;  %v3844_v62 = vld [vmem:[%s4792_s3 + $0x240] sm:$0xff] }
  0x33   :  { %4966 = vst [vmem:[#allocation60_spill] sm:$0xff] %v3834_v56  ;;  %4967 = vst [vmem:[#allocation61_spill] sm:$0xff] %v3839_v60  ;;  %v3849_v43 = vld [vmem:[%s4792_s3 + $0x248] sm:$0xff]  ;;  %v3854_v57 = vld [vmem:[%s4792_s3 + $0x250] sm:$0xff] }
  0x34   :  { %4968 = vst [vmem:[#allocation62_spill] sm:$0xff] %v3844_v62  ;;  %4969 = vst [vmem:[#allocation63_spill] sm:$0xff] %v3849_v43  ;;  %v3859_v47 = vld [vmem:[%s4792_s3 + $0x258] sm:$0xff]  ;;  %v3864_v60 = vld [vmem:[%s4792_s3 + $0x260] sm:$0xff] }
  0x35   :  { %4970 = vst [vmem:[#allocation64_spill] sm:$0xff] %v3854_v57  ;;  %4971 = vst [vmem:[#allocation65_spill] sm:$0xff] %v3859_v47  ;;  %v3869_v62 = vld [vmem:[%s4792_s3 + $0x268] sm:$0xff]  ;;  %v3874_v43 = vld [vmem:[%s4792_s3 + $0x270] sm:$0xff] }
  0x36   :  { %4972 = vst [vmem:[#allocation66_spill] sm:$0xff] %v3864_v60  ;;  %4973 = vst [vmem:[#allocation67_spill] sm:$0xff] %v3869_v62  ;;  %v3879_v57 = vld [vmem:[%s4792_s3 + $0x278] sm:$0xff]  ;;  %v3884_v47 = vld [vmem:[%s4792_s3 + $0x280] sm:$0xff] }
  0x37   :  { %4974 = vst [vmem:[#allocation68_spill] sm:$0xff] %v3874_v43  ;;  %4975 = vst [vmem:[#allocation69_spill] sm:$0xff] %v3879_v57  ;;  %v3889_v60 = vld [vmem:[%s4792_s3 + $0x288] sm:$0xff]  ;;  %v3894_v62 = vld [vmem:[%s4792_s3 + $0x290] sm:$0xff] }
  0x38   :  { %4976 = vst [vmem:[#allocation70_spill] sm:$0xff] %v3884_v47  ;;  %4977 = vst [vmem:[#allocation71_spill] sm:$0xff] %v3889_v60  ;;  %v3899_v43 = vld [vmem:[%s4792_s3 + $0x298] sm:$0xff]  ;;  %v3904_v57 = vld [vmem:[%s4792_s3 + $0x2a0] sm:$0xff] }
  0x39   :  { %4978 = vst [vmem:[#allocation72_spill] sm:$0xff] %v3894_v62  ;;  %4979 = vst [vmem:[#allocation73_spill] sm:$0xff] %v3899_v43  ;;  %v3909_v47 = vld [vmem:[%s4792_s3 + $0x2a8] sm:$0xff]  ;;  %v3914_v60 = vld [vmem:[%s4792_s3 + $0x2b0] sm:$0xff] }
  0x3a   :  { %4980 = vst [vmem:[#allocation74_spill] sm:$0xff] %v3904_v57  ;;  %4981 = vst [vmem:[#allocation75_spill] sm:$0xff] %v3909_v47  ;;  %v3919_v62 = vld [vmem:[%s4792_s3 + $0x2b8] sm:$0xff]  ;;  %v3924_v43 = vld [vmem:[%s4792_s3 + $0x2c0] sm:$0xff] }
  0x3b   :  { %4982 = vst [vmem:[#allocation76_spill] sm:$0xff] %v3914_v60  ;;  %4983 = vst [vmem:[#allocation77_spill] sm:$0xff] %v3919_v62  ;;  %v3929_v57 = vld [vmem:[%s4792_s3 + $0x2c8] sm:$0xff]  ;;  %v3934_v47 = vld [vmem:[%s4792_s3 + $0x2d0] sm:$0xff] }
  0x3c   :  { %4984 = vst [vmem:[#allocation78_spill] sm:$0xff] %v3924_v43  ;;  %4985 = vst [vmem:[#allocation79_spill] sm:$0xff] %v3929_v57  ;;  %v3939_v60 = vld [vmem:[%s4792_s3 + $0x2d8] sm:$0xff]  ;;  %v3944_v62 = vld [vmem:[%s4792_s3 + $0x2e0] sm:$0xff] }
  0x3d   :  { %4986 = vst [vmem:[#allocation80_spill] sm:$0xff] %v3934_v47  ;;  %4987 = vst [vmem:[#allocation81_spill] sm:$0xff] %v3939_v60  ;;  %v3949_v43 = vld [vmem:[%s4792_s3 + $0x2e8] sm:$0xff]  ;;  %v3954_v57 = vld [vmem:[%s4792_s3 + $0x2f0] sm:$0xff] }
  0x3e   :  { %4988 = vst [vmem:[#allocation82_spill] sm:$0xff] %v3944_v62  ;;  %4989 = vst [vmem:[#allocation83_spill] sm:$0xff] %v3949_v43  ;;  %v3959_v47 = vld [vmem:[%s4792_s3 + $0x2f8] sm:$0xff]  ;;  %v3964_v60 = vld [vmem:[%s4792_s3 + $0x300] sm:$0xff] }
  0x3f   :  { %4990 = vst [vmem:[#allocation84_spill] sm:$0xff] %v3954_v57  ;;  %4991 = vst [vmem:[#allocation85_spill] sm:$0xff] %v3959_v47  ;;  %v3969_v62 = vld [vmem:[%s4792_s3 + $0x308] sm:$0xff]  ;;  %v3974_v43 = vld [vmem:[%s4792_s3 + $0x310] sm:$0xff] }
  0x40   :  { %4992 = vst [vmem:[#allocation86_spill] sm:$0xff] %v3964_v60  ;;  %4993 = vst [vmem:[#allocation87_spill] sm:$0xff] %v3969_v62  ;;  %v3979_v57 = vld [vmem:[%s4792_s3 + $0x318] sm:$0xff]  ;;  %v3984_v47 = vld [vmem:[%s4792_s3 + $0x320] sm:$0xff] }
  0x41   :  { %4994 = vst [vmem:[#allocation88_spill] sm:$0xff] %v3974_v43  ;;  %4995 = vst [vmem:[#allocation89_spill] sm:$0xff] %v3979_v57  ;;  %v3989_v60 = vld [vmem:[%s4792_s3 + $0x328] sm:$0xff]  ;;  %v3994_v62 = vld [vmem:[%s4792_s3 + $0x330] sm:$0xff] }
  0x42   :  { %4996 = vst [vmem:[#allocation90_spill] sm:$0xff] %v3984_v47  ;;  %4997 = vst [vmem:[#allocation91_spill] sm:$0xff] %v3989_v60  ;;  %v3999_v43 = vld [vmem:[%s4792_s3 + $0x338] sm:$0xff]  ;;  %v4004_v57 = vld [vmem:[%s4792_s3 + $0x340] sm:$0xff] }
  0x43   :  { %4998 = vst [vmem:[#allocation92_spill] sm:$0xff] %v3994_v62  ;;  %4999 = vst [vmem:[#allocation93_spill] sm:$0xff] %v3999_v43  ;;  %v4009_v47 = vld [vmem:[%s4792_s3 + $0x348] sm:$0xff]  ;;  %v4014_v60 = vld [vmem:[%s4792_s3 + $0x350] sm:$0xff] }
  0x44   :  { %5000 = vst [vmem:[#allocation94_spill] sm:$0xff] %v4004_v57  ;;  %5001 = vst [vmem:[#allocation95_spill] sm:$0xff] %v4009_v47  ;;  %v4019_v62 = vld [vmem:[%s4792_s3 + $0x358] sm:$0xff]  ;;  %v4024_v43 = vld [vmem:[%s4792_s3 + $0x360] sm:$0xff] }
  0x45   :  { %5002 = vst [vmem:[#allocation96_spill] sm:$0xff] %v4014_v60  ;;  %5003 = vst [vmem:[#allocation97_spill] sm:$0xff] %v4019_v62  ;;  %v4029_v57 = vld [vmem:[%s4792_s3 + $0x368] sm:$0xff]  ;;  %v4034_v47 = vld [vmem:[%s4792_s3 + $0x370] sm:$0xff] }
  0x46   :  { %5004 = vst [vmem:[#allocation98_spill] sm:$0xff] %v4024_v43  ;;  %5005 = vst [vmem:[#allocation99_spill] sm:$0xff] %v4029_v57  ;;  %v4039_v60 = vld [vmem:[%s4792_s3 + $0x378] sm:$0xff]  ;;  %v4044_v62 = vld [vmem:[%s4792_s3 + $0x380] sm:$0xff] }
  0x47   :  { %5006 = vst [vmem:[#allocation100_spill] sm:$0xff] %v4034_v47  ;;  %5007 = vst [vmem:[#allocation101_spill] sm:$0xff] %v4039_v60  ;;  %v4049_v43 = vld [vmem:[%s4792_s3 + $0x388] sm:$0xff]  ;;  %v4054_v57 = vld [vmem:[%s4792_s3 + $0x390] sm:$0xff] }
  0x48   :  { %5008 = vst [vmem:[#allocation102_spill] sm:$0xff] %v4044_v62  ;;  %5009 = vst [vmem:[#allocation103_spill] sm:$0xff] %v4049_v43  ;;  %v4059_v47 = vld [vmem:[%s4792_s3 + $0x398] sm:$0xff]  ;;  %v4064_v60 = vld [vmem:[%s4792_s3 + $0x3a0] sm:$0xff] }
  0x49   :  { %5010 = vst [vmem:[#allocation104_spill] sm:$0xff] %v4054_v57  ;;  %5011 = vst [vmem:[#allocation105_spill] sm:$0xff] %v4059_v47  ;;  %v4069_v62 = vld [vmem:[%s4792_s3 + $0x3a8] sm:$0xff]  ;;  %v4074_v43 = vld [vmem:[%s4792_s3 + $0x3b0] sm:$0xff] }
  0x4a   :  { %5012 = vst [vmem:[#allocation106_spill] sm:$0xff] %v4064_v60  ;;  %5013 = vst [vmem:[#allocation107_spill] sm:$0xff] %v4069_v62  ;;  %v4079_v57 = vld [vmem:[%s4792_s3 + $0x3b8] sm:$0xff]  ;;  %v4084_v47 = vld [vmem:[%s4792_s3 + $0x3c0] sm:$0xff] }
  0x4b   :  { %5014 = vst [vmem:[#allocation108_spill] sm:$0xff] %v4074_v43  ;;  %5015 = vst [vmem:[#allocation109_spill] sm:$0xff] %v4079_v57  ;;  %v4089_v60 = vld [vmem:[%s4792_s3 + $0x3c8] sm:$0xff]  ;;  %v4094_v62 = vld [vmem:[%s4792_s3 + $0x3d0] sm:$0xff] }
  0x4c   :  { %5016 = vst [vmem:[#allocation110_spill] sm:$0xff] %v4084_v47  ;;  %5017 = vst [vmem:[#allocation111_spill] sm:$0xff] %v4089_v60  ;;  %v4099_v43 = vld [vmem:[%s4792_s3 + $0x3d8] sm:$0xff]  ;;  %v4104_v57 = vld [vmem:[%s4792_s3 + $0x3e0] sm:$0xff] }
  0x4d   :  { %5018 = vst [vmem:[#allocation112_spill] sm:$0xff] %v4094_v62  ;;  %5019 = vst [vmem:[#allocation113_spill] sm:$0xff] %v4099_v43  ;;  %v4109_v47 = vld [vmem:[%s4792_s3 + $0x3e8] sm:$0xff]  ;;  %v4114_v60 = vld [vmem:[%s4792_s3 + $0x3f0] sm:$0xff] }
  0x4e   :  { %5020 = vst [vmem:[#allocation114_spill] sm:$0xff] %v4104_v57  ;;  %5021 = vst [vmem:[#allocation115_spill] sm:$0xff] %v4109_v47  ;;  %v4119_v62 = vld [vmem:[%s4792_s3 + $0x3f8] sm:$0xff]  ;;  %v4124_v43 = vld [vmem:[%s4792_s3 + $0x400] sm:$0xff] }
  0x4f   :  { %5022 = vst [vmem:[#allocation116_spill] sm:$0xff] %v4114_v60  ;;  %5023 = vst [vmem:[#allocation117_spill] sm:$0xff] %v4119_v62  ;;  %v4129_v57 = vld [vmem:[%s4792_s3 + $0x408] sm:$0xff]  ;;  %v4134_v47 = vld [vmem:[%s4792_s3 + $0x410] sm:$0xff] }
  0x50   :  { %5024 = vst [vmem:[#allocation118_spill] sm:$0xff] %v4124_v43  ;;  %5025 = vst [vmem:[#allocation119_spill] sm:$0xff] %v4129_v57  ;;  %v4139_v60 = vld [vmem:[%s4792_s3 + $0x418] sm:$0xff]  ;;  %v4144_v62 = vld [vmem:[%s4792_s3 + $0x420] sm:$0xff] }
  0x51   :  { %5026 = vst [vmem:[#allocation120_spill] sm:$0xff] %v4134_v47  ;;  %5027 = vst [vmem:[#allocation121_spill] sm:$0xff] %v4139_v60  ;;  %v4149_v43 = vld [vmem:[%s4792_s3 + $0x428] sm:$0xff]  ;;  %v4154_v57 = vld [vmem:[%s4792_s3 + $0x430] sm:$0xff] }
  0x52   :  { %5028 = vst [vmem:[#allocation122_spill] sm:$0xff] %v4144_v62  ;;  %5029 = vst [vmem:[#allocation123_spill] sm:$0xff] %v4149_v43  ;;  %v4159_v47 = vld [vmem:[%s4792_s3 + $0x438] sm:$0xff]  ;;  %v4164_v60 = vld [vmem:[%s4792_s3 + $0x440] sm:$0xff] }
  0x53   :  { %5030 = vst [vmem:[#allocation124_spill] sm:$0xff] %v4154_v57  ;;  %5031 = vst [vmem:[#allocation125_spill] sm:$0xff] %v4159_v47  ;;  %v4169_v62 = vld [vmem:[%s4792_s3 + $0x448] sm:$0xff]  ;;  %v4174_v43 = vld [vmem:[%s4792_s3 + $0x450] sm:$0xff] }
  0x54   :  { %5032 = vst [vmem:[#allocation126_spill] sm:$0xff] %v4164_v60  ;;  %5033 = vst [vmem:[#allocation127_spill] sm:$0xff] %v4169_v62  ;;  %v4179_v57 = vld [vmem:[%s4792_s3 + $0x458] sm:$0xff]  ;;  %v4184_v47 = vld [vmem:[%s4792_s3 + $0x460] sm:$0xff] }
  0x55   :  { %5034 = vst [vmem:[#allocation128_spill] sm:$0xff] %v4174_v43  ;;  %5035 = vst [vmem:[#allocation129_spill] sm:$0xff] %v4179_v57  ;;  %v4189_v60 = vld [vmem:[%s4792_s3 + $0x468] sm:$0xff]  ;;  %v4194_v62 = vld [vmem:[%s4792_s3 + $0x470] sm:$0xff] }
  0x56   :  { %5036 = vst [vmem:[#allocation130_spill] sm:$0xff] %v4184_v47  ;;  %5037 = vst [vmem:[#allocation131_spill] sm:$0xff] %v4189_v60  ;;  %v4199_v43 = vld [vmem:[%s4792_s3 + $0x478] sm:$0xff] }
  0x57   :  { %5038 = vst [vmem:[#allocation132_spill] sm:$0xff] %v4194_v62  ;;  %5039 = vst [vmem:[#allocation133_spill] sm:$0xff] %v4199_v43 }
  0x58   :  { %370 = vsyncadd [#allocation3], 18432  ;;  %v3272_v57 = vld [vmem:[#allocation5 + $0x4] ss:$24 sps:$4 sm:$0xff]   ;;  %v3276_v42 = vld [vmem:[#allocation5] ss:$24 sps:$4 sm:$0xff]  }
  0x59   :  { %v3274_v56 = vld [vmem:[#allocation5 + $0xc] ss:$24 sps:$4 sm:$0xff]   ;;  %v3277_v47 = vld [vmem:[#allocation5 + $0x8] ss:$24 sps:$4 sm:$0xff]   ;;  %751 = vmatprep.subr.bf16.mxu0 %v3272_v57  ;;  %v3280_v60 = vld [vmem:[#allocation5 + $0x3c] ss:$24 sps:$4 sm:$0xff]  }
  0x5a   :  { %v3278_v58 = vld [vmem:[#allocation5 + $0x34] ss:$24 sps:$4 sm:$0xff]   ;;  %814 = vmatprep.subr.bf16.mxu1 %v3274_v56  ;;  %752 = vmatpush1.bf16.msra.mxu0 %v3276_v42  ;;  %v3282_v46 = vld [vmem:[#allocation5 + $0x30] ss:$24 sps:$4 sm:$0xff]   ;;  %v3284_v62 = vld [vmem:[#allocation5 + $0x64] ss:$24 sps:$4 sm:$0xff]  }
  0x5b   :  { %815 = vmatpush1.bf16.msra.mxu1 %v3277_v47  ;;  %753 = vmatprep.subr.bf16.mxu0 %v3278_v58  ;;  %v3283_v61 = vld [vmem:[#allocation5 + $0x38] ss:$24 sps:$4 sm:$0xff]   ;;  %v3286_v41 = vld [vmem:[#allocation5 + $0x6c] ss:$24 sps:$4 sm:$0xff]   ;;  %v3289_v43 = vld [vmem:[#allocation5 + $0x68] ss:$24 sps:$4 sm:$0xff]  }
  0x5c   :  { %816 = vmatprep.subr.bf16.mxu1 %v3280_v60  ;;  %v3288_v59 = vld [vmem:[#allocation5 + $0x60] ss:$24 sps:$4 sm:$0xff]   ;;  %v3290_v45 = vld [vmem:[#allocation5 + $0x94] ss:$24 sps:$4 sm:$0xff]   ;;  %v3294_v57 = vld [vmem:[#allocation5 + $0x90] ss:$24 sps:$4 sm:$0xff]  }
  0x5d   :  { %v3292_v63 = vld [vmem:[#allocation5 + $0x9c] ss:$24 sps:$4 sm:$0xff]   ;;  %v3295_v42 = vld [vmem:[#allocation5 + $0x98] ss:$24 sps:$4 sm:$0xff]   ;;  %v3298_v56 = vld [vmem:[#allocation5 + $0xcc] ss:$24 sps:$4 sm:$0xff]  }
  0x5e   :  { %754 = vmatpush1.bf16.msra.mxu0 %v3282_v46  ;;  %v3296_v47 = vld [vmem:[#allocation5 + $0xc4] ss:$24 sps:$4 sm:$0xff]   ;;  %v3300_v58 = vld [vmem:[#allocation5 + $0xc0] ss:$24 sps:$4 sm:$0xff]   ;;  %v3302_v46 = vld [vmem:[#allocation5 + $0xf4] ss:$24 sps:$4 sm:$0xff]  }
  0x5f   :  { %817 = vmatpush1.bf16.msra.mxu1 %v3283_v61  ;;  %755 = vmatprep.subr.bf16.mxu0 %v3284_v62  ;;  %v3301_v60 = vld [vmem:[#allocation5 + $0xc8] ss:$24 sps:$4 sm:$0xff]   ;;  %v3304_v61 = vld [vmem:[#allocation5 + $0xfc] ss:$24 sps:$4 sm:$0xff]   ;;  %vm722_vm0 = vcmask 97280   ;;  %vm732_vm1 = vcmask 1045504  }
  0x60   :  { %818 = vmatprep.subr.bf16.mxu1 %v3286_v41  ;;  %v3306_v62 = vld [vmem:[#allocation5 + $0xf0] ss:$24 sps:$4 sm:$0xff]   ;;  %v3356_v40 = vld [vmem:[#allocation5 + $0x160] ss:$24 sps:$4 sm:$0xff]  }
  0x61   :  { %v3307_v41 = vld [vmem:[#allocation5 + $0xf8] ss:$24 sps:$4 sm:$0xff]  }
  0x62   :  { %756 = vmatpush1.bf16.msra.mxu0 %v3288_v59  ;;  %v3308_v59 = vld [vmem:[#allocation5 + $0x124] ss:$24 sps:$4 sm:$0xff]   ;;  %v3361_v51 = vld [vmem:[#allocation5 + $0x190] ss:$24 sps:$4 sm:$0x3f]  }
  0x63   :  { %819 = vmatpush1.bf16.msra.mxu1 %v3289_v43  ;;  %757 = vmatprep.subr.bf16.mxu0 %v3290_v45  ;;  %v3310_v43 = vld [vmem:[#allocation5 + $0x12c] ss:$24 sps:$4 sm:$0xff]   ;;  %v3312_v45 = vld [vmem:[#allocation5 + $0x120] ss:$24 sps:$4 sm:$0xff]  }
  0x64   :  { %820 = vmatprep.subr.bf16.mxu1 %v3292_v63  ;;  %v3313_v63 = vld [vmem:[#allocation5 + $0x128] ss:$24 sps:$4 sm:$0xff]  }
  0x66   :  { %758 = vmatpush1.bf16.msra.mxu0 %v3294_v57  ;;  %v3314_v57 = vld [vmem:[#allocation5 + $0x154] ss:$24 sps:$4 sm:$0xff]  }
  0x67   :  { %821 = vmatpush1.bf16.msra.mxu1 %v3295_v42  ;;  %759 = vmatprep.subr.bf16.mxu0 %v3296_v47  ;;  %v4204_v42 = vld [vmem:[%s4789_s0 + $0x4] ss:$8 sps:$4 sm:$0xff]   ;;  %v3316_v47 = vld [vmem:[#allocation5 + $0x15c] ss:$24 sps:$4 sm:$0xff]  }
  0x68   :  { %822 = vmatprep.subr.bf16.mxu1 %v3298_v56  ;;  %v3320_v56 = vld [vmem:[#allocation5 + $0x184] ss:$24 sps:$4 sm:$0x3f]   ;;  %2767 = vmatprep.mubr.msk.bf16.mxu0 %vm722_vm0, %v4204_v42 }
  0x69   :  { %2771 = vmatprep.mubr.msk.bf16.mxu1 %vm722_vm0, %v4204_v42 }
  0x6a   :  { %760 = vmatpush1.bf16.msra.mxu0 %v3300_v58  ;;  %v3318_v58 = vld [vmem:[#allocation5 + $0x150] ss:$24 sps:$4 sm:$0xff]  }
  0x6b   :  { %823 = vmatpush1.bf16.msra.mxu1 %v3301_v60  ;;  %761 = vmatprep.subr.bf16.mxu0 %v3302_v46  ;;  %v3322_v60 = vld [vmem:[#allocation5 + $0x18c] ss:$24 sps:$4 sm:$0x3f]   ;;  %v3319_v46 = vld [vmem:[#allocation5 + $0x158] ss:$24 sps:$4 sm:$0xff]  }
  0x6c   :  { %824 = vmatprep.subr.bf16.mxu1 %v3304_v61  ;;  %v3324_v61 = vld [vmem:[#allocation5 + $0x180] ss:$24 sps:$4 sm:$0x3f]  }
  0x6e   :  { %762 = vmatpush1.bf16.msra.mxu0 %v3306_v62  ;;  %v3325_v62 = vld [vmem:[#allocation5 + $0x188] ss:$24 sps:$4 sm:$0x3f]  }
  0x6f   :  { %825 = vmatpush1.bf16.msra.mxu1 %v3307_v41  ;;  %763 = vmatprep.subr.bf16.mxu0 %v3308_v59  ;;  %v734_v41 = vsel %vm732_vm1, %v3324_v61, 0  ;;  %v3331_v59 = vld [vmem:[#allocation5 + $0x14] ss:$24 sps:$4 sm:$0xff]   ;;  %v3343_v61 = vld [vmem:[#allocation5 + $0xa4] ss:$24 sps:$4 sm:$0xff]  }
  0x70   :  { %826 = vmatprep.subr.bf16.mxu1 %v3310_v43  ;;  %v740_v43 = vsel %vm732_vm1, %v3325_v62, 0  ;;  %v3344_v62 = vld [vmem:[%s4789_s0 + $0x24] ss:$8 sps:$4 sm:$0xff]  }
  0x72   :  { %764 = vmatpush1.bf16.msra.mxu0 %v3312_v45  ;;  %v3328_v45 = vld [vmem:[%s4789_s0] ss:$8 sps:$4 sm:$0xff]  }
  0x73   :  { %827 = vmatpush1.bf16.msra.mxu1 %v3313_v63  ;;  %765 = vmatprep.subr.bf16.mxu0 %v3314_v57  ;;  %v3329_v63 = vld [vmem:[#allocation5 + $0x10] ss:$24 sps:$4 sm:$0xff]   ;;  %v3334_v57 = vld [vmem:[#allocation5 + $0x44] ss:$24 sps:$4 sm:$0xff]  }
  0x74   :  { %828 = vmatprep.subr.bf16.mxu1 %v3316_v47  ;;  %v3335_v47 = vld [vmem:[%s4789_s0 + $0x14] ss:$8 sps:$4 sm:$0xff]  }
  0x76   :  { %766 = vmatpush1.bf16.msra.mxu0 %v3318_v58  ;;  %v3340_v58 = vld [vmem:[#allocation5 + $0x74] ss:$24 sps:$4 sm:$0xff]  }
  0x77   :  { %829 = vmatpush1.bf16.msra.mxu1 %v3319_v46  ;;  %2766 = vmatprep.subr.msk.bf16.mxu0 %vm732_vm1, %v3320_v56  ;;  %v3332_v56 = vld [vmem:[#allocation5 + $0x40] ss:$24 sps:$4 sm:$0xff]   ;;  %v3338_v46 = vld [vmem:[#allocation5 + $0x70] ss:$24 sps:$4 sm:$0xff]  }
  0x78   :  { %2770 = vmatprep.subr.msk.bf16.mxu1 %vm732_vm1, %v3322_v60  ;;  %v3337_v60 = vld [vmem:[%s4789_s0 + $0x10] ss:$8 sps:$4 sm:$0xff]  }
  0x7a   :  { %768 = vmatpush1.bf16.msra.mxu0 %v734_v41  ;;  %v3341_v41 = vld [vmem:[#allocation5 + $0xa0] ss:$24 sps:$4 sm:$0xff]  }
  0x7b   :  { %831 = vmatpush1.bf16.msra.mxu1 %v740_v43  ;;  %877 = vmatprep.subr.bf16.mxu0 %v3331_v59  ;;  %v3349_v59 = vld [vmem:[#allocation5 + $0xd4] ss:$24 sps:$4 sm:$0xff]   ;;  %v3346_v43 = vld [vmem:[%s4789_s0 + $0x20] ss:$8 sps:$4 sm:$0xff]  }
  0x7d   :  { %784 = vmatmul.mubr.bf16.vlgmr.msra.gmra.mrb[0].mxu0 %v3328_v45 }
  0x7e   :  { %847 = vmatmul.mubr.bf16.vlgmr.msra.gmra.mrb[0].mxu1 %v3328_v45  ;;  %878 = vmatpush1.bf16.msra.mxu0 %v3329_v63  ;;  %v3347_v63 = vld [vmem:[#allocation5 + $0xd0] ss:$24 sps:$4 sm:$0xff]  }
  0x7f   :  { %879 = vmatprep.subr.bf16.mxu0 %v3334_v57  ;;  %2768 = vmatprep.mubr.msk.bf16.mxu0 %vm722_vm0, %v3335_v47  ;;  %v3352_v57 = vld [vmem:[#allocation5 + $0x104] ss:$24 sps:$4 sm:$0xff]  }
  0x80   :  { %2772 = vmatprep.mubr.msk.bf16.mxu1 %vm722_vm0, %v3335_v47 }
  0x82   :  { %880 = vmatpush1.bf16.msra.mxu0 %v3332_v56  ;;  %v3350_v56 = vld [vmem:[#allocation5 + $0x100] ss:$24 sps:$4 sm:$0xff]  }
  0x83   :  { %881 = vmatprep.subr.bf16.mxu0 %v3340_v58  ;;  %v3355_v58 = vld [vmem:[#allocation5 + $0x134] ss:$24 sps:$4 sm:$0xff]  }
  0x85   :  { %794 = vmatmul.mubr.bf16.gmra.mrb[4].mxu0 %v3337_v60 }
  0x86   :  { %857 = vmatmul.mubr.bf16.gmra.mrb[4].mxu1 %v3337_v60  ;;  %882 = vmatpush1.bf16.msra.mxu0 %v3338_v46  ;;  %v3353_v46 = vld [vmem:[#allocation5 + $0x130] ss:$24 sps:$4 sm:$0xff]  }
  0x87   :  { %883 = vmatprep.subr.bf16.mxu0 %v3343_v61  ;;  %2769 = vmatprep.mubr.msk.bf16.mxu0 %vm722_vm0, %v3344_v62  ;;  %v3358_v61 = vld [vmem:[#allocation5 + $0x164] ss:$24 sps:$4 sm:$0xff]  }
  0x88   :  { %2773 = vmatprep.mubr.msk.bf16.mxu1 %vm722_vm0, %v3344_v62 }
  0x8a   :  { %884 = vmatpush1.bf16.msra.mxu0 %v3341_v41  ;;  %v3359_v41 = vld [vmem:[#allocation5 + $0x194] ss:$24 sps:$4 sm:$0x3f]  }
  0x8b   :  { %885 = vmatprep.subr.bf16.mxu0 %v3349_v59  ;;  %v746_v59 = vsel %vm732_vm1, %v3361_v51, 0 }
  0x8d   :  { %804 = vmatmul.mubr.bf16.gmra.mrb[8].mxu0 %v3346_v43 }
  0x8e   :  { %867 = vmatmul.mubr.bf16.gmra.mrb[8].mxu1 %v3346_v43  ;;  %886 = vmatpush1.bf16.msra.mxu0 %v3347_v63 }
  0x8f   :  { %887 = vmatprep.subr.bf16.mxu0 %v3352_v57  ;;  %2775 = vmatprep.mubr.msk.bf16.mxu0 %vm722_vm0, %v4204_v42 }
  0x92   :  { %888 = vmatpush1.bf16.msra.mxu0 %v3350_v56 }
  0x93   :  { %889 = vmatprep.subr.bf16.mxu0 %v3355_v58 }
  0x96   :  { %890 = vmatpush1.bf16.msra.mxu0 %v3353_v46 }
  0x97   :  { %891 = vmatprep.subr.bf16.mxu0 %v3358_v61 }
  0x9a   :  { %892 = vmatpush1.bf16.msra.mxu0 %v3356_v40 }
  0x9b   :  { %2774 = vmatprep.subr.msk.bf16.mxu0 %vm732_vm1, %v3359_v41 }
  0x9e   :  { %894 = vmatpush1.bf16.msra.mxu0 %v746_v59 }
  0xa1   :  { %910 = vmatmul.mubr.bf16.vlgmr.msra.gmra.mrb[12].mxu0 %v3328_v45 }
  0xa2   :  { %2776 = vmatprep.mubr.msk.bf16.mxu0 %vm722_vm0, %v3335_v47 }
  0xa9   :  { %920 = vmatmul.mubr.bf16.gmra.mrb[16].mxu0 %v3337_v60 }
  0xaa   :  { %2777 = vmatprep.mubr.msk.bf16.mxu0 %vm722_vm0, %v3344_v62 }
  0xb1   :  { %930 = vmatmul.mubr.bf16.gmra.mrb[20].mxu0 %v3346_v43 }
 0x150   :  { %v785_v42 = vpop.f32.mrb[0].mxu0 }
 0x151   :  { %v787_v63 = vpop.f32.mrb[1].mxu0  ;;  %v848_v57 = vpop.f32.mrb[0].mxu1 }
 0x152   :  { %v789_v56 = vpop.f32.mrb[2].mxu0  ;;  %v850_v58 = vpop.f32.mrb[1].mxu1 }
 0x153   :  { %v4239_v46 = vpop.f32.mrb[3].mxu0  ;;  %v4241_v40 = vpop.f32.mrb[2].mxu1 }
 0x154   :  { %v854_v61 = vpop.f32.mrb[3].mxu1 }
 0x158   :  { %v795_v41 = vpop.f32.mrb[4].mxu0 }
 0x159   :  { %v4243_v51 = vpop.f32.mrb[4].mxu1  ;;  %v4245_v45 = vpop.f32.mrb[5].mxu0 }
 0x15a   :  { %v860_v47 = vpop.f32.mrb[5].mxu1  ;;  %v799_v60 = vpop.f32.mrb[6].mxu0 }
 0x15b   :  { %v940_v59 = vmax.f32 %v785_v42, %v799_v60  ;;  %v862_v62 = vpop.f32.mrb[6].mxu1  ;;  %v801_v43 = vpop.f32.mrb[7].mxu0 }
 0x15c   :  { %v942_v44 = vmax.f32 %v848_v57, %v862_v62  ;;  %v941_v55 = vmax.f32 %v787_v63, %v801_v43  ;;  %v864_v27 = vpop.f32.mrb[7].mxu1 }
 0x15d   :  { %v943_v50 = vmax.f32 %v850_v58, %v864_v27 }
 0x15f   :  { %v958_v31 = vmax.f32 %v940_v59, %v943_v50 }
 0x160   :  { %v805_v54 = vpop.f32.mrb[8].mxu0 }
 0x161   :  { %v946_v26 = vmax.f32 %v789_v56, %v805_v54  ;;  %v868_v49 = vpop.f32.mrb[8].mxu1  ;;  %v807_v30 = vpop.f32.mrb[9].mxu0  ;;  %v969_v56 = vlaneseq }
 0x162   :  { %v948_v53 = vmax.f32 %v4241_v40, %v868_v49  ;;  %v947_v25 = vmax.f32 %v4239_v46, %v807_v30  ;;  %v870_v48 = vpop.f32.mrb[9].mxu1  ;;  %v809_v29 = vpop.f32.mrb[10].mxu0 }
 0x163   :  { %v949_v52 = vmax.f32 %v854_v61, %v870_v48  ;;  %v952_v24 = vmax.f32 %v795_v41, %v809_v29  ;;  %v872_v42 = vpop.f32.mrb[10].mxu1  ;;  %v811_v60 = vpop.f32.mrb[11].mxu0  ;;  %v970_v62 = vshrl.u32 %v969_v56, 7  ;;  %v967_v29 = vld [vmem:[%s4791_s2] sm:$0x7] }
 0x164   :  { %v954_v57 = vmax.f32 %v4243_v51, %v872_v42  ;;  %v953_v63 = vmax.f32 %v4245_v45, %v811_v60  ;;  %v874_v27 = vpop.f32.mrb[11].mxu1  ;;  %v3419_v45 = vmov 1966171168  }
 0x165   :  { %v961_v50 = vmax.f32 %v946_v26, %v949_v52  ;;  %v955_v58 = vmax.f32 %v860_v47, %v874_v27  ;;  %v971_v46 = vsub.s32 0, %v970_v62  ;;  %v975_v48 = vsub.s32 1, %v970_v62 }
 0x166   :  { %v979_v41 = vsub.s32 2, %v970_v62  ;;  %v1010_v43 = vunpack.c.l.s4 %v3419_v45 }
 0x167   :  { %v964_v54 = vmax.f32 %v952_v24, %v955_v58  ;;  %v972_v51 = vrot.slane %v967_v29, %v971_v46  ;;  %v976_v47 = vrot.slane %v967_v29, %v975_v48 }
 0x168   :  { %v980_v27 = vrot.slane %v967_v29, %v979_v41  ;;  %v1011_v56 = vunpack.c.0.s8 %v1010_v43 }
 0x169   :  { %v984_v58 = vadd.f32 %v972_v51, %v958_v31  ;;  %v987_v48 = vadd.f32 %v972_v51, %v961_v50 }
 0x16a   :  { %v4254_v38 = vsub.s32 %v1011_v56, %v970_v62 }
 0x16b   :  { %v993_v15 = vmax.f32 %v984_v58, 0.0 }
 0x174   :  { %v911_v59 = vpop.f32.mrb[12].mxu0 }
 0x175   :  { %v913_v49 = vpop.f32.mrb[13].mxu0 }
 0x176   :  { %v915_v40 = vpop.f32.mrb[14].mxu0 }
 0x177   :  { %v917_v30 = vpop.f32.mrb[15].mxu0 }
 0x17c   :  { %v921_v61 = vpop.f32.mrb[16].mxu0 }
 0x17d   :  { %v923_v26 = vpop.f32.mrb[17].mxu0 }
 0x17e   :  { %v925_v52 = vpop.f32.mrb[18].mxu0 }
 0x17f   :  { %v944_v24 = vmax.f32 %v911_v59, %v925_v52  ;;  %v927_v42 = vpop.f32.mrb[19].mxu0 }
 0x180   :  { %v945_v60 = vmax.f32 %v913_v49, %v927_v42 }
 0x181   :  { %v959_v35 = vmax.f32 %v941_v55, %v944_v24 }
 0x182   :  { %v960_v28 = vmax.f32 %v942_v44, %v945_v60 }
 0x183   :  { %v985_v39 = vadd.f32 %v976_v47, %v959_v35  ;;  %v990_v35 = vadd.f32 %v972_v51, %v964_v54 }
 0x184   :  { %v986_v11 = vadd.f32 %v980_v27, %v960_v28  ;;  %v931_v34 = vpop.f32.mrb[20].mxu0 }
 0x185   :  { %v994_v46 = vmax.f32 %v985_v39, 0.0  ;;  %v950_v10 = vmax.f32 %v915_v40, %v931_v34  ;;  %v933_v45 = vpop.f32.mrb[21].mxu0 }
 0x186   :  { %v995_v33 = vmax.f32 %v986_v11, 0.0  ;;  %v951_v14 = vmax.f32 %v917_v30, %v933_v45  ;;  %v935_v59 = vpop.f32.mrb[22].mxu0  ;;  %v996_v11 = vmax.f32 %v987_v48, 0.0 }
 0x187   :  { %v2778_v52 = vpack.c.bf16 %v994_v46, %v993_v15  ;;  %v962_v49 = vmax.f32 %v947_v25, %v950_v10  ;;  %v956_v29 = vmax.f32 %v921_v61, %v935_v59  ;;  %v937_v31 = vpop.f32.mrb[23].mxu0  ;;  %v999_v61 = vmax.f32 %v990_v35, 0.0 }
 0x188   :  { %v1004_v41 = vpack.c.bf16 %v995_v33, %v995_v33  ;;  %v963_v55 = vmax.f32 %v948_v53, %v951_v14  ;;  %v957_v44 = vmax.f32 %v923_v26, %v937_v31 }
 0x189   :  { %v1015_v28 = vrot.slane %v2778_v52, %v4254_v38  ;;  %v988_v43 = vadd.f32 %v976_v47, %v962_v49  ;;  %v965_v62 = vmax.f32 %v953_v63, %v956_v29 }
 0x18a   :  { %v1022_v39 = vrot.slane %v1004_v41, %v4254_v38  ;;  %v989_v34 = vadd.f32 %v980_v27, %v963_v55  ;;  %v966_v40 = vmax.f32 %v954_v57, %v957_v44 }
 0x18b   :  { %v997_v30 = vmax.f32 %v988_v43, 0.0  ;;  %v991_v24 = vadd.f32 %v976_v47, %v965_v62  ;;  %v1291_v43 = vunpack.c.l.s8.bf16 %v3484_v0  ;;  %v1300_v62 = vunpack.c.h.s8.bf16 %v3504_v4 }
 0x18c   :  { %v1023_v50 = vcombine.low %v1015_v28, %v1022_v39  ;;  %v1033_v15 = vcombine.high %v1015_v28, %v1022_v39  ;;  %v998_v10 = vmax.f32 %v989_v34, 0.0  ;;  %v992_v25 = vadd.f32 %v980_v27, %v966_v40 }
 0x18d   :  { %v2781_v33 = vpack.c.bf16 %v997_v30, %v996_v11  ;;  %v1000_v14 = vmax.f32 %v991_v24, 0.0  ;;  %v1299_v28 = vunpack.c.l.s8.bf16 %v3504_v4 }
 0x18e   :  { %v1030_v53 = vrot.slane %v1023_v50, %v4254_v38  ;;  %2779 = vst.sshfl [vmem:[#allocation4] sm:$0x15 pattern:$0x73625140] %v1023_v50  ;;  %v1040_v54 = vrot.slane %v1033_v15, %v4254_v38  ;;  %v1051_v63 = vpack.c.bf16 %v998_v10, %v998_v10  ;;  %v1001_v51 = vmax.f32 %v992_v25, 0.0 }
 0x18f   :  { %2780 = vst.sshfl [vmem:[#allocation4 + $0x3] sm:$0x15 pattern:$0x73625140] %v1033_v15  ;;  %v1062_v57 = vrot.slane %v2781_v33, %v4254_v38  ;;  %v2784_v26 = vpack.c.bf16 %v1000_v14, %v999_v61 }
 0x190   :  { %v1043_v42 = vcombine.high %v1030_v53, %v1030_v53  ;;  %v1046_v47 = vcombine.high %v1040_v54, %v1040_v54  ;;  %v1069_v60 = vrot.slane %v1051_v63, %v4254_v38  ;;  %v1098_v58 = vpack.c.bf16 %v1001_v51, %v1001_v51 }
 0x191   :  { %v1109_v27 = vrot.slane %v2784_v26, %v4254_v38 }
 0x192   :  { %1045 = vst [vmem:[#allocation4 + $0x6] sm:$0x7] %v1043_v42  ;;  %1048 = vst [vmem:[#allocation4 + $0x9] sm:$0x7] %v1046_v47  ;;  %v1070_v56 = vcombine.low %v1062_v57, %v1069_v60  ;;  %v1080_v46 = vcombine.high %v1062_v57, %v1069_v60  ;;  %v1116_v45 = vrot.slane %v1098_v58, %v4254_v38 }
 0x194   :  { %v1077_v59 = vrot.slane %v1070_v56, %v4254_v38  ;;  %2782 = vst.sshfl [vmem:[#allocation4 + $0xc] sm:$0x15 pattern:$0x73625140] %v1070_v56  ;;  %v1087_v48 = vrot.slane %v1080_v46, %v4254_v38  ;;  %v1117_v52 = vcombine.low %v1109_v27, %v1116_v45  ;;  %v1127_v49 = vcombine.high %v1109_v27, %v1116_v45 }
 0x195   :  { %2783 = vst.sshfl [vmem:[#allocation4 + $0xf] sm:$0x15 pattern:$0x73625140] %v1080_v46 }
 0x196   :  { %v1090_v29 = vcombine.high %v1077_v59, %v1077_v59  ;;  %v1093_v31 = vcombine.high %v1087_v48, %v1087_v48  ;;  %v1124_v41 = vrot.slane %v1117_v52, %v4254_v38  ;;  %2785 = vst.sshfl [vmem:[#allocation4 + $0x18] sm:$0x15 pattern:$0x73625140] %v1117_v52  ;;  %v1134_v55 = vrot.slane %v1127_v49, %v4254_v38 }
 0x197   :  { %2786 = vst.sshfl [vmem:[#allocation4 + $0x1b] sm:$0x15 pattern:$0x73625140] %v1127_v49 }
 0x198   :  { %1092 = vst [vmem:[#allocation4 + $0x12] sm:$0x7] %v1090_v29  ;;  %1095 = vst [vmem:[#allocation4 + $0x15] sm:$0x7] %v1093_v31  ;;  %v1137_v44 = vcombine.high %v1124_v41, %v1124_v41  ;;  %v1140_v35 = vcombine.high %v1134_v55, %v1134_v55 }
 0x19a   :  { %1139 = vst [vmem:[#allocation4 + $0x1e] sm:$0x7] %v1137_v44  ;;  %1142 = vst [vmem:[#allocation4 + $0x21] sm:$0x7] %v1140_v35 }
 0x19b   :  { %3412 = dma.done.wait [#allocation3], 18432 }
 0x19c   :  { %3413 = vsyncadd [#allocation3], 4294948864  ;;  %2792 = vmatprep.subr.bf16.mxu1 %v1299_v28  ;;  %v1292_v39 = vunpack.c.h.s8.bf16 %v3484_v0  ;;  %v1301_v34 = vunpack.c.l.s8.bf16 %v3509_v5  ;;  %v1331_v40 = vunpack.c.l.s8.bf16 %v3584_v20  ;;  %v1323_v11 = vunpack.c.l.s8.bf16 %v3564_v16  ;;  %v1579_v4 = vld [vmem:[#allocation4] sm:$0xff]  ;;  %v4303_v27 = vld [vmem:[#allocation4 + $0x8] sm:$0xff]  ;;  %s3423_s29 = smov [#allocation8]  }
 0x19d   :  { %2793 = vmatpush3.bf16.msra.mxu1 %v1291_v43  ;;  %v1332_v30 = vunpack.c.h.s8.bf16 %v3584_v20  ;;  %v1293_v24 = vunpack.c.l.s8.bf16 %v3489_v1  ;;  %v1324_v50 = vunpack.c.h.s8.bf16 %v3564_v16  ;;  %v1302_v0 = vunpack.c.h.s8.bf16 %v3509_v5  ;;  %v5040_v43 = vld [vmem:[#allocation15_spill] sm:$0xff]  ;;  %s2683_s3 = sshll.u32 %s3423_s29, 4  ;;  %s2684_s3 = int_to_ptr.vmem [resolvable:$true] %s2683_s3 }
 0x19e   :  { %2794 = vmatprep.subr.bf16.mxu1 %v1300_v62  ;;  %2836 = vmatprep.subr.bf16.mxu0 %v1331_v40  ;;  %v1596_v15 = vrot.slane %v1579_v4, %v4254_v38  ;;  %v1333_v10 = vunpack.c.l.s8.bf16 %v3589_v21  ;;  %v1294_v20 = vunpack.c.h.s8.bf16 %v3489_v1  ;;  %v1325_v61 = vunpack.c.l.s8.bf16 %v3569_v17  ;;  %v5042_v40 = vld [vmem:[#allocation13_spill] sm:$0xff]  ;;  %p3393_p9 = scmp.lt.s32.totalorder %s2684_s3, %s2684_s3 }
 0x19f   :  { %2837 = vmatpush3.bf16.msra.mxu0 %v1323_v11  ;;  %v1303_v33 = vunpack.c.l.s8.bf16 %v3514_v6  ;;  %v1334_v5 = vunpack.c.h.s8.bf16 %v3589_v21  ;;  %v1589_v14 = vcombine.high %v1579_v4, %v1579_v4  ;;  %v1295_v53 = vunpack.c.l.s8.bf16 %v3494_v2 }
 0x1a0   :  { %2838 = vmatprep.subr.bf16.mxu0 %v1332_v30  ;;  %v1604_v25 = vcombine.high %v1596_v15, %v1596_v15  ;;  %v1326_v54 = vunpack.c.h.s8.bf16 %v3569_v17  ;;  %v1304_v63 = vunpack.c.h.s8.bf16 %v3514_v6  ;;  %v1335_v51 = vunpack.c.l.s8.bf16 %v3594_v22 }
 0x1a1   :  { %2795 = vmatpush3.bf16.msra.mxu1 %v1292_v39  ;;  %v1603_v1 = vrot.slane %v1589_v14, %v4254_v38  ;;  %v1296_v21 = vunpack.c.h.s8.bf16 %v3494_v2  ;;  %v1327_v26 = vunpack.c.l.s8.bf16 %v3574_v18  ;;  %v1305_v17 = vunpack.c.l.s8.bf16 %v3519_v7  ;;  %v5041_v39 = vld [vmem:[#allocation25_spill] sm:$0xff] }
 0x1a2   :  { %2796 = vmatprep.subr.bf16.mxu1 %v1301_v34  ;;  %v1626_v16 = vrot.slane %v1604_v25, %v4254_v38  ;;  %v1336_v47 = vunpack.c.h.s8.bf16 %v3594_v22  ;;  %v1297_v6 = vunpack.c.l.s8.bf16 %v3499_v3  ;;  %v1328_v2 = vunpack.c.h.s8.bf16 %v3574_v18  ;;  %v5046_v25 = vld [vmem:[#allocation14_spill] sm:$0xff] }
 0x1a3   :  { %2839 = vmatpush3.bf16.msra.mxu0 %v1324_v50  ;;  %v1605_v57 = vcombine.high %v1603_v1, %v1603_v1  ;;  %v1306_v60 = vunpack.c.h.s8.bf16 %v3519_v7  ;;  %v1337_v58 = vunpack.c.l.s8.bf16 %v3599_v23  ;;  %v1298_v56 = vunpack.c.h.s8.bf16 %v3499_v3  ;;  %v5044_v50 = vld [vmem:[#allocation16_spill] sm:$0xff] }
 0x1a4   :  { %2840 = vmatprep.subr.bf16.mxu0 %v1333_v10  ;;  %1877 = vmatprep.mubr.bf16.mxu1 %v1626_v16  ;;  %v1329_v22 = vunpack.c.l.s8.bf16 %v3579_v19  ;;  %v1315_v46 = vunpack.c.l.s8.bf16 %v3544_v12  ;;  %v1338_v18 = vunpack.c.h.s8.bf16 %v3599_v23  ;;  %v4311_v7 = vrot.slane %v4303_v27, %v4254_v38 }
 0x1a5   :  { %2797 = vmatpush3.bf16.msra.mxu1 %v1293_v24  ;;  %v4294_v42 = vrot.slane %v1605_v57, %v4254_v38  ;;  %v4314_v45 = vrot.slane %v1596_v15, %v4254_v38  ;;  %v1636_v59 = vcombine.high %v1626_v16, %v1626_v16  ;;  %v1307_v3 = vunpack.c.l.s8.bf16 %v3524_v8  ;;  %v5047_v16 = vld [vmem:[#allocation29_spill] sm:$0xff] }
 0x1a6   :  { %2798 = vmatprep.subr.bf16.mxu1 %v1302_v0  ;;  %v1316_v48 = vunpack.c.h.s8.bf16 %v3544_v12  ;;  %v1330_v52 = vunpack.c.h.s8.bf16 %v3579_v19  ;;  %v1363_v23 = vunpack.c.l.s8.bf16 %v3664_v36  ;;  %v1653_v49 = vcombine.high %v4311_v7, %v4311_v7 }
 0x1a7   :  { %2841 = vmatpush3.bf16.msra.mxu0 %v1325_v61  ;;  %1957 = vmatprep.mubr.bf16.mxu0 %v4294_v42  ;;  %v1308_v29 = vunpack.c.h.s8.bf16 %v3524_v8  ;;  %v4325_v31 = vrot.slane %v1603_v1, %v4254_v38  ;;  %v1317_v12 = vunpack.c.l.s8.bf16 %v3549_v13  ;;  %v1355_v19 = vunpack.c.l.s8.bf16 %v3644_v32 }
 0x1a8   :  { %2842 = vmatprep.subr.bf16.mxu0 %v1334_v5  ;;  %v1364_v41 = vunpack.c.h.s8.bf16 %v3664_v36  ;;  %v4331_v55 = vrot.slane %v1653_v49, %v4254_v38  ;;  %v1309_v44 = vunpack.c.l.s8.bf16 %v3529_v9  ;;  %v1318_v8 = vunpack.c.h.s8.bf16 %v3549_v13 }
 0x1a9   :  { %2799 = vmatpush3.bf16.msra.mxu1 %v1294_v20  ;;  %v1356_v35 = vunpack.c.h.s8.bf16 %v3644_v32  ;;  %v1365_v28 = vunpack.c.l.s8.bf16 %v3669_v37  ;;  %v1310_v36 = vunpack.c.h.s8.bf16 %v3529_v9  ;;  %v1319_v62 = vunpack.c.l.s8.bf16 %v5040_v43  ;;  %v5043_v9 = vld [vmem:[#allocation28_spill] sm:$0xff] }
 0x1aa   :  { %2800 = vmatprep.subr.bf16.mxu1 %v1303_v33  ;;  %v1357_v34 = vunpack.c.l.s8.bf16 %v5041_v39  ;;  %v1366_v13 = vunpack.c.h.s8.bf16 %v3669_v37  ;;  %v1311_v32 = vunpack.c.l.s8.bf16 %v5042_v40  ;;  %v1320_v11 = vunpack.c.h.s8.bf16 %v5040_v43  ;;  %v5045_v37 = vld [vmem:[#allocation26_spill] sm:$0xff] }
 0x1ab   :  { %2843 = vmatpush3.bf16.msra.mxu0 %v1326_v54  ;;  %v1358_v30 = vunpack.c.h.s8.bf16 %v5041_v39  ;;  %v1367_v24 = vunpack.c.l.s8.bf16 %v5043_v9  ;;  %v1312_v4 = vunpack.c.h.s8.bf16 %v5042_v40  ;;  %v1321_v0 = vunpack.c.l.s8.bf16 %v5044_v50  ;;  %v5048_v54 = vld [vmem:[#allocation21_spill] sm:$0xff] }
 0x1ac   :  { %2844 = vmatprep.subr.bf16.mxu0 %v1335_v51  ;;  %v1359_v15 = vunpack.c.l.s8.bf16 %v5045_v37  ;;  %v1368_v10 = vunpack.c.h.s8.bf16 %v5043_v9  ;;  %v1313_v20 = vunpack.c.l.s8.bf16 %v5046_v25  ;;  %v1322_v61 = vunpack.c.h.s8.bf16 %v5044_v50 }
 0x1ad   :  { %2801 = vmatpush3.bf16.msra.mxu1 %v1295_v53  ;;  %v1360_v33 = vunpack.c.h.s8.bf16 %v5045_v37  ;;  %v1369_v5 = vunpack.c.l.s8.bf16 %v5047_v16  ;;  %v1638_v14 = vcombine.high %v4303_v27, %v4303_v27  ;;  %v1314_v53 = vunpack.c.h.s8.bf16 %v5046_v25  ;;  %v4407_v25 = vld [vmem:[#allocation4 + $0x10] sm:$0xff] }
 0x1ae   :  { %2802 = vmatprep.subr.bf16.mxu1 %v1304_v63  ;;  %v1347_v1 = vunpack.c.l.s8.bf16 %v5048_v54  ;;  %v5049_v63 = vld [vmem:[#allocation27_spill] sm:$0xff]  ;;  %v1370_v57 = vunpack.c.h.s8.bf16 %v5047_v16  ;;  %v5065_v16 = vld [vmem:[#allocation41_spill] sm:$0xff]  ;;  %vm3421_vm2 = vmmov 0   ;;  %vm2675_vm3 = vcmask 74752  }
 0x1af   :  { %2845 = vmatpush3.bf16.msra.mxu0 %v1327_v26  ;;  %v1361_v51 = vunpack.c.l.s8.bf16 %v5049_v63  ;;  %v1634_v26 = vcombine.high %v4314_v45, %v4314_v45 }
 0x1b0   :  { %2846 = vmatprep.subr.bf16.mxu0 %v1336_v47  ;;  %v5050_v47 = vld [vmem:[#allocation17_spill] sm:$0xff] }
 0x1b1   :  { %2803 = vmatpush3.bf16.msra.mxu1 %v1296_v21  ;;  %v4362_v21 = vrot.slane %v1638_v14, %v4254_v38 }
 0x1b2   :  { %2804 = vmatprep.subr.bf16.mxu1 %v1305_v17  ;;  %v1637_v17 = vcombine.high %v4294_v42, %v4294_v42  ;;  %v4377_v42 = vrot.slane %v4311_v7, %v4254_v38 }
 0x1b3   :  { %2847 = vmatpush3.bf16.msra.mxu0 %v1328_v2  ;;  %v1348_v2 = vunpack.c.h.s8.bf16 %v5048_v54  ;;  %v1635_v54 = vcombine.high %v4325_v31, %v4325_v31 }
 0x1b4   :  { %2848 = vmatprep.subr.bf16.mxu0 %v1337_v58  ;;  %v5051_v58 = vld [vmem:[#allocation42_spill] sm:$0xff] }
 0x1b5   :  { %2805 = vmatpush3.bf16.msra.mxu1 %v1297_v6  ;;  %v1339_v6 = vunpack.c.l.s8.bf16 %v5050_v47  ;;  %v1395_v27 = vunpack.c.l.s8.bf16 %v5051_v58 }
 0x1b6   :  { %2806 = vmatprep.subr.bf16.mxu1 %v1306_v60  ;;  %v1362_v60 = vunpack.c.h.s8.bf16 %v5049_v63 }
 0x1b7   :  { %2849 = vmatpush3.bf16.msra.mxu0 %v1329_v22  ;;  %v1340_v22 = vunpack.c.h.s8.bf16 %v5050_v47 }
 0x1b8   :  { %2850 = vmatprep.subr.bf16.mxu0 %v1338_v18 }
 0x1b9   :  { %2807 = vmatpush3.bf16.msra.mxu1 %v1298_v56  ;;  %v1654_v56 = vcombine.high %v4362_v21, %v4362_v21 }
 0x1ba   :  { %2814 = vmatprep.subr.bf16.mxu1 %v1315_v46  ;;  %v5052_v46 = vld [vmem:[#allocation22_spill] sm:$0xff] }
 0x1bb   :  { %2851 = vmatpush3.bf16.msra.mxu0 %v1330_v52  ;;  %v1349_v18 = vunpack.c.l.s8.bf16 %v5052_v46  ;;  %v5054_v52 = vld [vmem:[#allocation18_spill] sm:$0xff]  ;;  %v1350_v7 = vunpack.c.h.s8.bf16 %v5052_v46  ;;  %v5070_v46 = vld [vmem:[#allocation31_spill] sm:$0xff] }
 0x1bc   :  { %1878 = vmatmul.mubr.bf16.vlgmr.msra.gmra.mrb[12].mxu1 %v4314_v45  ;;  %2880 = vmatprep.subr.bf16.mxu0 %v1363_v23  ;;  %v5053_v45 = vld [vmem:[#allocation38_spill] sm:$0xff]  ;;  %v1341_v23 = vunpack.c.l.s8.bf16 %v5054_v52 }
 0x1bd   :  { %2815 = vmatpush3.bf16.msra.mxu1 %v1307_v3  ;;  %1917 = vmatprep.mubr.bf16.mxu1 %v1636_v59  ;;  %v1387_v59 = vunpack.c.l.s8.bf16 %v5053_v45  ;;  %v1396_v3 = vunpack.c.h.s8.bf16 %v5051_v58  ;;  %v1388_v49 = vunpack.c.h.s8.bf16 %v5053_v45  ;;  %v5069_v58 = vld [vmem:[#allocation54_spill] sm:$0xff] }
 0x1be   :  { %2816 = vmatprep.subr.bf16.mxu1 %v1316_v48  ;;  %1958 = vmatmul.mubr.bf16.vlgmr.msra.gmra.mrb[24].mxu0 %v4325_v31  ;;  %v4383_v48 = vrot.slane %v1654_v56, %v4254_v38  ;;  %v1420_v45 = vunpack.c.h.s8.bf16 %v5069_v58 }
 0x1bf   :  { %2881 = vmatpush3.bf16.msra.mxu0 %v1355_v19  ;;  %2037 = vmatprep.mubr.bf16.mxu0 %v4331_v55  ;;  %v1342_v19 = vunpack.c.h.s8.bf16 %v5054_v52  ;;  %v1374_v52 = vunpack.c.h.s8.bf16 %v5070_v46 }
 0x1c0   :  { %2882 = vmatprep.subr.bf16.mxu0 %v1364_v41  ;;  %v5056_v41 = vld [vmem:[#allocation23_spill] sm:$0xff] }
 0x1c1   :  { %2817 = vmatpush3.bf16.msra.mxu1 %v1308_v29  ;;  %v5055_v29 = vld [vmem:[#allocation43_spill] sm:$0xff] }
 0x1c2   :  { %2818 = vmatprep.subr.bf16.mxu1 %v1317_v12  ;;  %v1397_v12 = vunpack.c.l.s8.bf16 %v5055_v29 }
 0x1c3   :  { %2883 = vmatpush3.bf16.msra.mxu0 %v1356_v35 }
 0x1c4   :  { %2884 = vmatprep.subr.bf16.mxu0 %v1365_v28  ;;  %v1398_v28 = vunpack.c.h.s8.bf16 %v5055_v29 }
 0x1c5   :  { %2819 = vmatpush3.bf16.msra.mxu1 %v1309_v44  ;;  %v1351_v44 = vunpack.c.l.s8.bf16 %v5056_v41 }
 0x1c6   :  { %2820 = vmatprep.subr.bf16.mxu1 %v1318_v8  ;;  %v5057_v8 = vld [vmem:[#allocation39_spill] sm:$0xff] }
 0x1c7   :  { %2885 = vmatpush3.bf16.msra.mxu0 %v1357_v34  ;;  %v1389_v35 = vunpack.c.l.s8.bf16 %v5057_v8  ;;  %v1390_v39 = vunpack.c.h.s8.bf16 %v5057_v8  ;;  %v5059_v34 = vld [vmem:[#allocation44_spill] sm:$0xff] }
 0x1c8   :  { %2886 = vmatprep.subr.bf16.mxu0 %v1366_v13  ;;  %v1399_v13 = vunpack.c.l.s8.bf16 %v5059_v34 }
 0x1c9   :  { %2821 = vmatpush3.bf16.msra.mxu1 %v1310_v36  ;;  %v5058_v36 = vld [vmem:[#allocation19_spill] sm:$0xff] }
 0x1ca   :  { %2822 = vmatprep.subr.bf16.mxu1 %v1319_v62  ;;  %v1343_v43 = vunpack.c.l.s8.bf16 %v5058_v36  ;;  %v1352_v62 = vunpack.c.h.s8.bf16 %v5056_v41  ;;  %v1344_v40 = vunpack.c.h.s8.bf16 %v5058_v36 }
 0x1cb   :  { %2887 = vmatpush3.bf16.msra.mxu0 %v1358_v30  ;;  %v5061_v30 = vld [vmem:[#allocation40_spill] sm:$0xff] }
 0x1cc   :  { %2888 = vmatprep.subr.bf16.mxu0 %v1367_v24  ;;  %v1391_v9 = vunpack.c.l.s8.bf16 %v5061_v30  ;;  %v1400_v24 = vunpack.c.h.s8.bf16 %v5059_v34  ;;  %v1392_v37 = vunpack.c.h.s8.bf16 %v5061_v30 }
 0x1cd   :  { %2823 = vmatpush3.bf16.msra.mxu1 %v1311_v32  ;;  %v5060_v32 = vld [vmem:[#allocation24_spill] sm:$0xff] }
 0x1ce   :  { %2824 = vmatprep.subr.bf16.mxu1 %v1320_v11  ;;  %v1353_v11 = vunpack.c.l.s8.bf16 %v5060_v32 }
 0x1cf   :  { %2889 = vmatpush3.bf16.msra.mxu0 %v1359_v15  ;;  %v5063_v15 = vld [vmem:[#allocation45_spill] sm:$0xff] }
 0x1d0   :  { %2890 = vmatprep.subr.bf16.mxu0 %v1368_v10  ;;  %v1401_v10 = vunpack.c.l.s8.bf16 %v5063_v15  ;;  %v1402_v14 = vunpack.c.h.s8.bf16 %v5063_v15  ;;  %v5081_v15 = vld [vmem:[#allocation57_spill] sm:$0xff] }
 0x1d1   :  { %2825 = vmatpush3.bf16.msra.mxu1 %v1312_v4  ;;  %v5062_v4 = vld [vmem:[#allocation20_spill] sm:$0xff] }
 0x1d2   :  { %2826 = vmatprep.subr.bf16.mxu1 %v1321_v0  ;;  %v1345_v50 = vunpack.c.l.s8.bf16 %v5062_v4  ;;  %v1354_v0 = vunpack.c.h.s8.bf16 %v5060_v32 }
 0x1d3   :  { %2891 = vmatpush3.bf16.msra.mxu0 %v1360_v33 }
 0x1d4   :  { %2892 = vmatprep.subr.bf16.mxu0 %v1369_v5  ;;  %v1393_v5 = vunpack.c.l.s8.bf16 %v5065_v16 }
 0x1d5   :  { %2827 = vmatpush3.bf16.msra.mxu1 %v1313_v20  ;;  %v1346_v20 = vunpack.c.h.s8.bf16 %v5062_v4  ;;  %v1687_v4 = vcombine.high %v4407_v25, %v4407_v25 }
 0x1d6   :  { %2828 = vmatprep.subr.bf16.mxu1 %v1322_v61  ;;  %v5064_v61 = vld [vmem:[#allocation34_spill] sm:$0xff] }
 0x1d7   :  { %2893 = vmatpush3.bf16.msra.mxu0 %v1361_v51  ;;  %v1379_v33 = vunpack.c.l.s8.bf16 %v5064_v61  ;;  %v1685_v51 = vcombine.high %v4331_v55, %v4331_v55  ;;  %v4430_v55 = vrot.slane %v4362_v21, %v4254_v38 }
 0x1d8   :  { %2894 = vmatprep.subr.bf16.mxu0 %v1370_v57  ;;  %v1380_v57 = vunpack.c.h.s8.bf16 %v5064_v61  ;;  %v4467_v61 = vrot.slane %v1687_v4, %v4254_v38 }
 0x1d9   :  { %2829 = vmatpush3.bf16.msra.mxu1 %v1314_v53  ;;  %v4415_v53 = vrot.slane %v4407_v25, %v4254_v38  ;;  %v5082_v25 = vld [vmem:[#allocation46_spill] sm:$0xff] }
 0x1da   :  { %2858 = vmatprep.subr.bf16.mxu1 %v1347_v1  ;;  %v5066_v1 = vld [vmem:[#allocation30_spill] sm:$0xff] }
 0x1db   :  { %2895 = vmatpush3.bf16.msra.mxu0 %v1362_v60  ;;  %v1371_v63 = vunpack.c.l.s8.bf16 %v5066_v1  ;;  %v1372_v31 = vunpack.c.h.s8.bf16 %v5066_v1  ;;  %v5083_v1 = vld [vmem:[#allocation74_spill] sm:$0xff] }
 0x1dc   :  { %1918 = vmatmul.mubr.bf16.vlgmr.msra.gmra.mrb[16].mxu1 %v1634_v26  ;;  %2924 = vmatprep.subr.bf16.mxu0 %v1395_v27  ;;  %v1394_v26 = vunpack.c.h.s8.bf16 %v5065_v16  ;;  %v1419_v27 = vunpack.c.l.s8.bf16 %v5069_v58  ;;  %v1403_v16 = vunpack.c.l.s8.bf16 %v5082_v25 }
 0x1dd   :  { %2859 = vmatpush3.bf16.msra.mxu1 %v1339_v6  ;;  %1997 = vmatprep.mubr.bf16.mxu1 %v1637_v17  ;;  %v5067_v17 = vld [vmem:[#allocation58_spill] sm:$0xff]  ;;  %v1702_v6 = vcombine.high %v4415_v53, %v4415_v53 }
 0x1de   :  { %2860 = vmatprep.subr.bf16.mxu1 %v1348_v2  ;;  %2038 = vmatmul.mubr.bf16.vlgmr.msra.gmra.mrb[28].mxu0 %v4377_v42  ;;  %v1427_v47 = vunpack.c.l.s8.bf16 %v5067_v17  ;;  %v5068_v2 = vld [vmem:[#allocation35_spill] sm:$0xff]  ;;  %v1428_v56 = vunpack.c.h.s8.bf16 %v5067_v17  ;;  %v5085_v17 = vld [vmem:[#allocation70_spill] sm:$0xff] }
 0x1df   :  { %2925 = vmatpush3.bf16.msra.mxu0 %v1387_v59  ;;  %2117 = vmatprep.mubr.bf16.mxu0 %v4383_v48  ;;  %v1381_v60 = vunpack.c.l.s8.bf16 %v5068_v2  ;;  %v1382_v21 = vunpack.c.h.s8.bf16 %v5068_v2  ;;  %v5071_v59 = vld [vmem:[#allocation59_spill] sm:$0xff]  ;;  %v1452_v58 = vunpack.c.h.s8.bf16 %v5085_v17 }
 0x1e0   :  { %2926 = vmatprep.subr.bf16.mxu0 %v1396_v3  ;;  %v1429_v3 = vunpack.c.l.s8.bf16 %v5071_v59  ;;  %v5086_v2 = vld [vmem:[#allocation47_spill] sm:$0xff] }
 0x1e1   :  { %2861 = vmatpush3.bf16.msra.mxu1 %v1340_v22  ;;  %v4436_v22 = vrot.slane %v1702_v6, %v4254_v38  ;;  %v1460_v6 = vunpack.c.h.s8.bf16 %v5083_v1 }
 0x1e2   :  { %2862 = vmatprep.subr.bf16.mxu1 %v1349_v18  ;;  %v1373_v18 = vunpack.c.l.s8.bf16 %v5070_v46  ;;  %v1406_v46 = vunpack.c.h.s8.bf16 %v5086_v2 }
 0x1e3   :  { %2927 = vmatpush3.bf16.msra.mxu0 %v1388_v49  ;;  %v5073_v49 = vld [vmem:[#allocation55_spill] sm:$0xff] }
 0x1e4   :  { %2928 = vmatprep.subr.bf16.mxu0 %v1397_v12  ;;  %v1421_v29 = vunpack.c.l.s8.bf16 %v5073_v49  ;;  %v1430_v12 = vunpack.c.h.s8.bf16 %v5071_v59  ;;  %v1422_v8 = vunpack.c.h.s8.bf16 %v5073_v49 }
 0x1e5   :  { %2863 = vmatpush3.bf16.msra.mxu1 %v1341_v23  ;;  %v5072_v23 = vld [vmem:[#allocation36_spill] sm:$0xff] }
 0x1e6   :  { %2864 = vmatprep.subr.bf16.mxu1 %v1350_v7  ;;  %v1383_v7 = vunpack.c.l.s8.bf16 %v5072_v23 }
 0x1e7   :  { %2929 = vmatpush3.bf16.msra.mxu0 %v1389_v35  ;;  %v5075_v35 = vld [vmem:[#allocation60_spill] sm:$0xff] }
 0x1e8   :  { %2930 = vmatprep.subr.bf16.mxu0 %v1398_v28  ;;  %v1431_v28 = vunpack.c.l.s8.bf16 %v5075_v35 }
 0x1e9   :  { %2865 = vmatpush3.bf16.msra.mxu1 %v1342_v19  ;;  %v5074_v19 = vld [vmem:[#allocation32_spill] sm:$0xff] }
 0x1ea   :  { %2866 = vmatprep.subr.bf16.mxu1 %v1351_v44  ;;  %v1375_v41 = vunpack.c.l.s8.bf16 %v5074_v19  ;;  %v1384_v44 = vunpack.c.h.s8.bf16 %v5072_v23  ;;  %v1376_v36 = vunpack.c.h.s8.bf16 %v5074_v19 }
 0x1eb   :  { %2931 = vmatpush3.bf16.msra.mxu0 %v1390_v39  ;;  %v5077_v39 = vld [vmem:[#allocation56_spill] sm:$0xff] }
 0x1ec   :  { %2932 = vmatprep.subr.bf16.mxu0 %v1399_v13  ;;  %v1423_v34 = vunpack.c.l.s8.bf16 %v5077_v39  ;;  %v1432_v13 = vunpack.c.h.s8.bf16 %v5075_v35  ;;  %v1424_v30 = vunpack.c.h.s8.bf16 %v5077_v39 }
 0x1ed   :  { %2867 = vmatpush3.bf16.msra.mxu1 %v1343_v43  ;;  %v5076_v43 = vld [vmem:[#allocation37_spill] sm:$0xff] }
 0x1ee   :  { %2868 = vmatprep.subr.bf16.mxu1 %v1352_v62  ;;  %v1385_v62 = vunpack.c.l.s8.bf16 %v5076_v43 }
 0x1ef   :  { %2933 = vmatpush3.bf16.msra.mxu0 %v1391_v9  ;;  %v5079_v9 = vld [vmem:[#allocation61_spill] sm:$0xff] }
 0x1f0   :  { %2934 = vmatprep.subr.bf16.mxu0 %v1400_v24  ;;  %v1433_v24 = vunpack.c.l.s8.bf16 %v5079_v9 }
 0x1f1   :  { %2869 = vmatpush3.bf16.msra.mxu1 %v1344_v40  ;;  %v5078_v40 = vld [vmem:[#allocation33_spill] sm:$0xff] }
 0x1f2   :  { %2870 = vmatprep.subr.bf16.mxu1 %v1353_v11  ;;  %v1377_v32 = vunpack.c.l.s8.bf16 %v5078_v40  ;;  %v1386_v11 = vunpack.c.h.s8.bf16 %v5076_v43 }
 0x1f3   :  { %2935 = vmatpush3.bf16.msra.mxu0 %v1392_v37 }
 0x1f4   :  { %2936 = vmatprep.subr.bf16.mxu0 %v1401_v10  ;;  %v1425_v10 = vunpack.c.l.s8.bf16 %v5081_v15 }
 0x1f5   :  { %2871 = vmatpush3.bf16.msra.mxu1 %v1345_v50  ;;  %v1378_v50 = vunpack.c.h.s8.bf16 %v5078_v40  ;;  %v4512_v40 = vld [vmem:[#allocation4 + $0x18] sm:$0xff] }
 0x1f6   :  { %2872 = vmatprep.subr.bf16.mxu1 %v1354_v0  ;;  %v5080_v0 = vld [vmem:[#allocation50_spill] sm:$0xff] }
 0x1f7   :  { %2937 = vmatpush3.bf16.msra.mxu0 %v1393_v5  ;;  %v1411_v37 = vunpack.c.l.s8.bf16 %v5080_v0  ;;  %v1686_v5 = vcombine.high %v4383_v48, %v4383_v48  ;;  %v4482_v48 = vrot.slane %v4415_v53, %v4254_v38 }
 0x1f8   :  { %2938 = vmatprep.subr.bf16.mxu0 %v1402_v14  ;;  %v1412_v14 = vunpack.c.h.s8.bf16 %v5080_v0  ;;  %v1684_v0 = vcombine.high %v4430_v55, %v4430_v55 }
 0x1f9   :  { %2873 = vmatpush3.bf16.msra.mxu1 %v1346_v20  ;;  %v1434_v20 = vunpack.c.h.s8.bf16 %v5079_v9  ;;  %v5097_v9 = vld [vmem:[#allocation73_spill] sm:$0xff] }
 0x1fa   :  { %2902 = vmatprep.subr.bf16.mxu1 %v1379_v33  ;;  %v1683_v33 = vcombine.high %v4377_v42, %v4377_v42  ;;  %v1404_v42 = vunpack.c.h.s8.bf16 %v5082_v25  ;;  %v5099_v25 = vld [vmem:[#allocation90_spill] sm:$0xff] }
 0x1fb   :  { %2939 = vmatpush3.bf16.msra.mxu0 %v1394_v26 }
 0x1fc   :  { %1998 = vmatmul.mubr.bf16.vlgmr.msra.gmra.mrb[20].mxu1 %v1635_v54  ;;  %2968 = vmatprep.subr.bf16.mxu0 %v1427_v47  ;;  %v1426_v54 = vunpack.c.h.s8.bf16 %v5081_v15  ;;  %v1451_v47 = vunpack.c.l.s8.bf16 %v5085_v17 }
 0x1fd   :  { %2903 = vmatpush3.bf16.msra.mxu1 %v1371_v63  ;;  %2077 = vmatprep.mubr.bf16.mxu1 %v1685_v51  ;;  %v1459_v63 = vunpack.c.l.s8.bf16 %v5083_v1  ;;  %v1703_v51 = vcombine.high %v4467_v61, %v4467_v61  ;;  %v5101_v1 = vld [vmem:[#allocation86_spill] sm:$0xff] }
 0x1fe   :  { %2904 = vmatprep.subr.bf16.mxu1 %v1380_v57  ;;  %2118 = vmatmul.mubr.bf16.vlgmr.msra.gmra.mrb[32].mxu0 %v4430_v55  ;;  %v5084_v57 = vld [vmem:[#allocation51_spill] sm:$0xff]  ;;  %v1484_v17 = vunpack.c.h.s8.bf16 %v5101_v1 }
 0x1ff   :  { %2969 = vmatpush3.bf16.msra.mxu0 %v1419_v27  ;;  %2197 = vmatprep.mubr.bf16.mxu0 %v4436_v22  ;;  %v1413_v26 = vunpack.c.l.s8.bf16 %v5084_v57  ;;  %v1414_v53 = vunpack.c.h.s8.bf16 %v5084_v57  ;;  %v5087_v27 = vld [vmem:[#allocation75_spill] sm:$0xff] }
 0x200   :  { %2970 = vmatprep.subr.bf16.mxu0 %v1428_v56  ;;  %v1461_v56 = vunpack.c.l.s8.bf16 %v5087_v27  ;;  %v5102_v57 = vld [vmem:[#allocation63_spill] sm:$0xff] }
 0x201   :  { %2905 = vmatpush3.bf16.msra.mxu1 %v1372_v31  ;;  %v4488_v31 = vrot.slane %v1703_v51, %v4254_v38  ;;  %v1492_v51 = vunpack.c.h.s8.bf16 %v5099_v25 }
 0x202   :  { %2906 = vmatprep.subr.bf16.mxu1 %v1381_v60  ;;  %v1405_v60 = vunpack.c.l.s8.bf16 %v5086_v2  ;;  %v1438_v2 = vunpack.c.h.s8.bf16 %v5102_v57 }
 0x203   :  { %2971 = vmatpush3.bf16.msra.mxu0 %v1420_v45  ;;  %v5089_v45 = vld [vmem:[#allocation71_spill] sm:$0xff] }
 0x204   :  { %2972 = vmatprep.subr.bf16.mxu0 %v1429_v3  ;;  %v1453_v59 = vunpack.c.l.s8.bf16 %v5089_v45  ;;  %v1462_v3 = vunpack.c.h.s8.bf16 %v5087_v27  ;;  %v1454_v49 = vunpack.c.h.s8.bf16 %v5089_v45 }
 0x205   :  { %2907 = vmatpush3.bf16.msra.mxu1 %v1373_v18  ;;  %v5088_v18 = vld [vmem:[#allocation52_spill] sm:$0xff] }
 0x206   :  { %2908 = vmatprep.subr.bf16.mxu1 %v1382_v21  ;;  %v1415_v21 = vunpack.c.l.s8.bf16 %v5088_v18 }
 0x207   :  { %2973 = vmatpush3.bf16.msra.mxu0 %v1421_v29  ;;  %v5091_v29 = vld [vmem:[#allocation76_spill] sm:$0xff] }
 0x208   :  { %2974 = vmatprep.subr.bf16.mxu0 %v1430_v12  ;;  %v1463_v12 = vunpack.c.l.s8.bf16 %v5091_v29 }
 0x209   :  { %2909 = vmatpush3.bf16.msra.mxu1 %v1374_v52  ;;  %v5090_v52 = vld [vmem:[#allocation48_spill] sm:$0xff] }
 0x20a   :  { %2910 = vmatprep.subr.bf16.mxu1 %v1383_v7  ;;  %v1407_v23 = vunpack.c.l.s8.bf16 %v5090_v52  ;;  %v1416_v7 = vunpack.c.h.s8.bf16 %v5088_v18  ;;  %v1408_v19 = vunpack.c.h.s8.bf16 %v5090_v52 }
 0x20b   :  { %2975 = vmatpush3.bf16.msra.mxu0 %v1422_v8  ;;  %v5093_v8 = vld [vmem:[#allocation72_spill] sm:$0xff] }
 0x20c   :  { %2976 = vmatprep.subr.bf16.mxu0 %v1431_v28  ;;  %v1455_v35 = vunpack.c.l.s8.bf16 %v5093_v8  ;;  %v1464_v28 = vunpack.c.h.s8.bf16 %v5091_v29  ;;  %v1456_v39 = vunpack.c.h.s8.bf16 %v5093_v8 }
 0x20d   :  { %2911 = vmatpush3.bf16.msra.mxu1 %v1375_v41  ;;  %v5092_v41 = vld [vmem:[#allocation53_spill] sm:$0xff] }
 0x20e   :  { %2912 = vmatprep.subr.bf16.mxu1 %v1384_v44  ;;  %v1417_v44 = vunpack.c.l.s8.bf16 %v5092_v41 }
 0x20f   :  { %2977 = vmatpush3.bf16.msra.mxu0 %v1423_v34  ;;  %v5095_v34 = vld [vmem:[#allocation77_spill] sm:$0xff] }
 0x210   :  { %2978 = vmatprep.subr.bf16.mxu0 %v1432_v13  ;;  %v1465_v13 = vunpack.c.l.s8.bf16 %v5095_v34  ;;  %v1466_v4 = vunpack.c.h.s8.bf16 %v5095_v34  ;;  %v5113_v34 = vld [vmem:[#allocation89_spill] sm:$0xff] }
 0x211   :  { %2913 = vmatpush3.bf16.msra.mxu1 %v1376_v36  ;;  %v5094_v36 = vld [vmem:[#allocation49_spill] sm:$0xff] }
 0x212   :  { %2914 = vmatprep.subr.bf16.mxu1 %v1385_v62  ;;  %v1409_v43 = vunpack.c.l.s8.bf16 %v5094_v36  ;;  %v1418_v62 = vunpack.c.h.s8.bf16 %v5092_v41 }
 0x213   :  { %2979 = vmatpush3.bf16.msra.mxu0 %v1424_v30 }
 0x214   :  { %2980 = vmatprep.subr.bf16.mxu0 %v1433_v24  ;;  %v1457_v24 = vunpack.c.l.s8.bf16 %v5097_v9 }
 0x215   :  { %2915 = vmatpush3.bf16.msra.mxu1 %v1377_v32  ;;  %v1410_v32 = vunpack.c.h.s8.bf16 %v5094_v36  ;;  %v1736_v36 = vcombine.high %v4512_v40, %v4512_v40 }
 0x216   :  { %2916 = vmatprep.subr.bf16.mxu1 %v1386_v11  ;;  %v5096_v11 = vld [vmem:[#allocation66_spill] sm:$0xff] }
 0x217   :  { %2981 = vmatpush3.bf16.msra.mxu0 %v1425_v10  ;;  %v1443_v30 = vunpack.c.l.s8.bf16 %v5096_v11  ;;  %v1734_v10 = vcombine.high %v4436_v22, %v4436_v22  ;;  %v4535_v22 = vrot.slane %v4467_v61, %v4254_v38 }
 0x218   :  { %2982 = vmatprep.subr.bf16.mxu0 %v1434_v20  ;;  %v1444_v20 = vunpack.c.h.s8.bf16 %v5096_v11  ;;  %v4572_v11 = vrot.slane %v1736_v36, %v4254_v38 }
 0x219   :  { %2917 = vmatpush3.bf16.msra.mxu1 %v1378_v50  ;;  %v4520_v50 = vrot.slane %v4512_v40, %v4254_v38  ;;  %v5114_v40 = vld [vmem:[#allocation78_spill] sm:$0xff]  ;;  %v1733_v36 = vcombine.high %v4535_v22, %v4535_v22 }
 0x21a   :  { %2946 = vmatprep.subr.bf16.mxu1 %v1411_v37  ;;  %v5098_v37 = vld [vmem:[#allocation62_spill] sm:$0xff] }
 0x21b   :  { %2983 = vmatpush3.bf16.msra.mxu0 %v1426_v54  ;;  %v1435_v15 = vunpack.c.l.s8.bf16 %v5098_v37  ;;  %v1436_v55 = vunpack.c.h.s8.bf16 %v5098_v37  ;;  %v5115_v37 = vld [vmem:[#allocation106_spill] sm:$0xff] }
 0x21c   :  { %2078 = vmatmul.mubr.bf16.vlgmr.msra.gmra.mrb[24].mxu1 %v1683_v33  ;;  %3012 = vmatprep.subr.bf16.mxu0 %v1459_v63  ;;  %v1458_v33 = vunpack.c.h.s8.bf16 %v5097_v9  ;;  %v1483_v63 = vunpack.c.l.s8.bf16 %v5101_v1  ;;  %v1467_v9 = vunpack.c.l.s8.bf16 %v5114_v40 }
 0x21d   :  { %2947 = vmatpush3.bf16.msra.mxu1 %v1403_v16  ;;  %2157 = vmatprep.mubr.bf16.mxu1 %v1686_v5  ;;  %v1491_v16 = vunpack.c.l.s8.bf16 %v5099_v25  ;;  %v1751_v5 = vcombine.high %v4520_v50, %v4520_v50  ;;  %v5117_v25 = vld [vmem:[#allocation102_spill] sm:$0xff] }
 0x21e   :  { %2948 = vmatprep.subr.bf16.mxu1 %v1412_v14  ;;  %2198 = vmatmul.mubr.bf16.vlgmr.msra.gmra.mrb[36].mxu0 %v4482_v48  ;;  %v5100_v14 = vld [vmem:[#allocation67_spill] sm:$0xff]  ;;  %v1516_v1 = vunpack.c.h.s8.bf16 %v5117_v25 }
 0x21f   :  { %3013 = vmatpush3.bf16.msra.mxu0 %v1451_v47  ;;  %2277 = vmatprep.mubr.bf16.mxu0 %v4488_v31  ;;  %v1445_v54 = vunpack.c.l.s8.bf16 %v5100_v14  ;;  %v1446_v61 = vunpack.c.h.s8.bf16 %v5100_v14  ;;  %v5103_v47 = vld [vmem:[#allocation91_spill] sm:$0xff] }
 0x220   :  { %3014 = vmatprep.subr.bf16.mxu0 %v1460_v6  ;;  %v1493_v6 = vunpack.c.l.s8.bf16 %v5103_v47  ;;  %v5118_v14 = vld [vmem:[#allocation79_spill] sm:$0xff] }
 0x221   :  { %2949 = vmatpush3.bf16.msra.mxu1 %v1404_v42  ;;  %v4541_v42 = vrot.slane %v1751_v5, %v4254_v38  ;;  %v1524_v5 = vunpack.c.h.s8.bf16 %v5115_v37 }
 0x222   :  { %2950 = vmatprep.subr.bf16.mxu1 %v1413_v26  ;;  %v1437_v26 = vunpack.c.l.s8.bf16 %v5102_v57  ;;  %v1470_v57 = vunpack.c.h.s8.bf16 %v5118_v14 }
 0x223   :  { %3015 = vmatpush3.bf16.msra.mxu0 %v1452_v58  ;;  %v5105_v58 = vld [vmem:[#allocation87_spill] sm:$0xff] }
 0x224   :  { %3016 = vmatprep.subr.bf16.mxu0 %v1461_v56  ;;  %v1485_v27 = vunpack.c.l.s8.bf16 %v5105_v58  ;;  %v1494_v56 = vunpack.c.h.s8.bf16 %v5103_v47  ;;  %v1486_v45 = vunpack.c.h.s8.bf16 %v5105_v58 }
 0x225   :  { %2951 = vmatpush3.bf16.msra.mxu1 %v1405_v60  ;;  %v5104_v60 = vld [vmem:[#allocation68_spill] sm:$0xff] }
 0x226   :  { %2952 = vmatprep.subr.bf16.mxu1 %v1414_v53  ;;  %v1447_v53 = vunpack.c.l.s8.bf16 %v5104_v60 }
 0x227   :  { %3017 = vmatpush3.bf16.msra.mxu0 %v1453_v59  ;;  %v5107_v59 = vld [vmem:[#allocation92_spill] sm:$0xff] }
 0x228   :  { %3018 = vmatprep.subr.bf16.mxu0 %v1462_v3  ;;  %v1495_v3 = vunpack.c.l.s8.bf16 %v5107_v59 }
 0x229   :  { %2953 = vmatpush3.bf16.msra.mxu1 %v1406_v46  ;;  %v5106_v46 = vld [vmem:[#allocation64_spill] sm:$0xff] }
 0x22a   :  { %2954 = vmatprep.subr.bf16.mxu1 %v1415_v21  ;;  %v1439_v18 = vunpack.c.l.s8.bf16 %v5106_v46  ;;  %v1448_v21 = vunpack.c.h.s8.bf16 %v5104_v60  ;;  %v1440_v52 = vunpack.c.h.s8.bf16 %v5106_v46 }
 0x22b   :  { %3019 = vmatpush3.bf16.msra.mxu0 %v1454_v49  ;;  %v5109_v49 = vld [vmem:[#allocation88_spill] sm:$0xff] }
 0x22c   :  { %3020 = vmatprep.subr.bf16.mxu0 %v1463_v12  ;;  %v1487_v29 = vunpack.c.l.s8.bf16 %v5109_v49  ;;  %v1496_v12 = vunpack.c.h.s8.bf16 %v5107_v59  ;;  %v1488_v8 = vunpack.c.h.s8.bf16 %v5109_v49 }
 0x22d   :  { %2955 = vmatpush3.bf16.msra.mxu1 %v1407_v23  ;;  %v5108_v23 = vld [vmem:[#allocation69_spill] sm:$0xff] }
 0x22e   :  { %2956 = vmatprep.subr.bf16.mxu1 %v1416_v7  ;;  %v1449_v7 = vunpack.c.l.s8.bf16 %v5108_v23 }
 0x22f   :  { %3021 = vmatpush3.bf16.msra.mxu0 %v1455_v35  ;;  %v5111_v35 = vld [vmem:[#allocation93_spill] sm:$0xff] }
 0x230   :  { %3022 = vmatprep.subr.bf16.mxu0 %v1464_v28  ;;  %v1497_v28 = vunpack.c.l.s8.bf16 %v5111_v35 }
 0x231   :  { %2957 = vmatpush3.bf16.msra.mxu1 %v1408_v19  ;;  %v5110_v19 = vld [vmem:[#allocation65_spill] sm:$0xff] }
 0x232   :  { %2958 = vmatprep.subr.bf16.mxu1 %v1417_v44  ;;  %v1441_v41 = vunpack.c.l.s8.bf16 %v5110_v19  ;;  %v1450_v44 = vunpack.c.h.s8.bf16 %v5108_v23 }
 0x233   :  { %3023 = vmatpush3.bf16.msra.mxu0 %v1456_v39 }
 0x234   :  { %3024 = vmatprep.subr.bf16.mxu0 %v1465_v13  ;;  %v1489_v13 = vunpack.c.l.s8.bf16 %v5113_v34 }
 0x235   :  { %2959 = vmatpush3.bf16.msra.mxu1 %v1409_v43  ;;  %v1442_v43 = vunpack.c.h.s8.bf16 %v5110_v19 }
 0x236   :  { %2960 = vmatprep.subr.bf16.mxu1 %v1418_v62  ;;  %v5112_v62 = vld [vmem:[#allocation82_spill] sm:$0xff] }
 0x237   :  { %3025 = vmatpush3.bf16.msra.mxu0 %v1457_v24  ;;  %v1475_v39 = vunpack.c.l.s8.bf16 %v5112_v62  ;;  %v1735_v24 = vcombine.high %v4488_v31, %v4488_v31  ;;  %v4587_v31 = vrot.slane %v4520_v50, %v4254_v38 }
 0x238   :  { %3026 = vmatprep.subr.bf16.mxu0 %v1466_v4  ;;  %v1476_v4 = vunpack.c.h.s8.bf16 %v5112_v62  ;;  %v5130_v62 = vld [vmem:[#allocation94_spill] sm:$0xff] }
 0x239   :  { %2961 = vmatpush3.bf16.msra.mxu1 %v1410_v32  ;;  %v1498_v32 = vunpack.c.h.s8.bf16 %v5111_v35 }
 0x23a   :  { %2990 = vmatprep.subr.bf16.mxu1 %v1443_v30  ;;  %v1732_v30 = vcombine.high %v4482_v48, %v4482_v48  ;;  %v1468_v48 = vunpack.c.h.s8.bf16 %v5114_v40 }
 0x23b   :  { %3027 = vmatpush3.bf16.msra.mxu0 %v1458_v33 }
 0x23c   :  { %2158 = vmatmul.mubr.bf16.vlgmr.msra.gmra.mrb[28].mxu1 %v1684_v0  ;;  %3056 = vmatprep.subr.bf16.mxu0 %v1491_v16  ;;  %v1490_v0 = vunpack.c.h.s8.bf16 %v5113_v34  ;;  %v1515_v16 = vunpack.c.l.s8.bf16 %v5117_v25  ;;  %v1783_v34 = vcombine.high %v4541_v42, %v4541_v42  ;;  %v5135_v25 = vld [vmem:[#allocation123_spill] sm:$0xff] }
 0x23d   :  { %2991 = vmatpush3.bf16.msra.mxu1 %v1435_v15  ;;  %2237 = vmatprep.mubr.bf16.mxu1 %v1734_v10  ;;  %v1523_v15 = vunpack.c.l.s8.bf16 %v5115_v37  ;;  %v1752_v10 = vcombine.high %v4572_v11, %v4572_v11 }
 0x23e   :  { %2992 = vmatprep.subr.bf16.mxu1 %v1444_v20  ;;  %2278 = vmatmul.mubr.bf16.vlgmr.msra.gmra.mrb[40].mxu0 %v4535_v22  ;;  %v5116_v20 = vld [vmem:[#allocation83_spill] sm:$0xff] }
 0x23f   :  { %3057 = vmatpush3.bf16.msra.mxu0 %v1483_v63  ;;  %2357 = vmatprep.mubr.bf16.mxu0 %v4541_v42  ;;  %v1477_v33 = vunpack.c.l.s8.bf16 %v5116_v20  ;;  %v1478_v50 = vunpack.c.h.s8.bf16 %v5116_v20  ;;  %v5119_v63 = vld [vmem:[#allocation107_spill] sm:$0xff]  ;;  %v4636_v42 = vrot.slane %v4572_v11, %v4254_v38 }
 0x240   :  { %3058 = vmatprep.subr.bf16.mxu0 %v1492_v51  ;;  %v1525_v51 = vunpack.c.l.s8.bf16 %v5119_v63 }
 0x241   :  { %2993 = vmatpush3.bf16.msra.mxu1 %v1436_v55  ;;  %v4593_v55 = vrot.slane %v1752_v10, %v4254_v38 }
 0x242   :  { %2994 = vmatprep.subr.bf16.mxu1 %v1445_v54  ;;  %v1469_v54 = vunpack.c.l.s8.bf16 %v5118_v14  ;;  %v5136_v14 = vld [vmem:[#allocation100_spill] sm:$0xff] }
 0x243   :  { %3059 = vmatpush3.bf16.msra.mxu0 %v1484_v17  ;;  %v5121_v17 = vld [vmem:[#allocation103_spill] sm:$0xff] }
 0x244   :  { %3060 = vmatprep.subr.bf16.mxu0 %v1493_v6  ;;  %v1517_v47 = vunpack.c.l.s8.bf16 %v5121_v17  ;;  %v1526_v6 = vunpack.c.h.s8.bf16 %v5119_v63  ;;  %v1518_v58 = vunpack.c.h.s8.bf16 %v5121_v17  ;;  %v1558_v63 = vunpack.c.h.s8.bf16 %v5135_v25  ;;  %v5139_v17 = vld [vmem:[#allocation124_spill] sm:$0xff] }
 0x245   :  { %2995 = vmatpush3.bf16.msra.mxu1 %v1437_v26  ;;  %v5120_v26 = vld [vmem:[#allocation84_spill] sm:$0xff] }
 0x246   :  { %2996 = vmatprep.subr.bf16.mxu1 %v1446_v61  ;;  %v1479_v61 = vunpack.c.l.s8.bf16 %v5120_v26 }
 0x247   :  { %3061 = vmatpush3.bf16.msra.mxu0 %v1485_v27  ;;  %v5123_v27 = vld [vmem:[#allocation108_spill] sm:$0xff] }
 0x248   :  { %3062 = vmatprep.subr.bf16.mxu0 %v1494_v56  ;;  %v1527_v56 = vunpack.c.l.s8.bf16 %v5123_v27 }
 0x249   :  { %2997 = vmatpush3.bf16.msra.mxu1 %v1438_v2  ;;  %v5122_v2 = vld [vmem:[#allocation80_spill] sm:$0xff] }
 0x24a   :  { %2998 = vmatprep.subr.bf16.mxu1 %v1447_v53  ;;  %v1471_v60 = vunpack.c.l.s8.bf16 %v5122_v2  ;;  %v1480_v53 = vunpack.c.h.s8.bf16 %v5120_v26  ;;  %v1472_v46 = vunpack.c.h.s8.bf16 %v5122_v2  ;;  %v1512_v26 = vunpack.c.h.s8.bf16 %v5136_v14  ;;  %v5140_v2 = vld [vmem:[#allocation101_spill] sm:$0xff] }
 0x24b   :  { %3063 = vmatpush3.bf16.msra.mxu0 %v1486_v45  ;;  %v5125_v45 = vld [vmem:[#allocation104_spill] sm:$0xff] }
 0x24c   :  { %3064 = vmatprep.subr.bf16.mxu0 %v1495_v3  ;;  %v1519_v59 = vunpack.c.l.s8.bf16 %v5125_v45  ;;  %v1528_v3 = vunpack.c.h.s8.bf16 %v5123_v27  ;;  %v1520_v49 = vunpack.c.h.s8.bf16 %v5125_v45  ;;  %v5142_v45 = vld [vmem:[#allocation97_spill] sm:$0xff] }
 0x24d   :  { %2999 = vmatpush3.bf16.msra.mxu1 %v1439_v18  ;;  %v5124_v18 = vld [vmem:[#allocation85_spill] sm:$0xff] }
 0x24e   :  { %3000 = vmatprep.subr.bf16.mxu1 %v1448_v21  ;;  %v1481_v21 = vunpack.c.l.s8.bf16 %v5124_v18 }
 0x24f   :  { %3065 = vmatpush3.bf16.msra.mxu0 %v1487_v29  ;;  %v5127_v29 = vld [vmem:[#allocation109_spill] sm:$0xff] }
 0x250   :  { %3066 = vmatprep.subr.bf16.mxu0 %v1496_v12  ;;  %v1529_v12 = vunpack.c.l.s8.bf16 %v5127_v29 }
 0x251   :  { %3001 = vmatpush3.bf16.msra.mxu1 %v1440_v52  ;;  %v5126_v52 = vld [vmem:[#allocation81_spill] sm:$0xff] }
 0x252   :  { %3002 = vmatprep.subr.bf16.mxu1 %v1449_v7  ;;  %v1473_v23 = vunpack.c.l.s8.bf16 %v5126_v52  ;;  %v1482_v7 = vunpack.c.h.s8.bf16 %v5124_v18  ;;  %v1474_v19 = vunpack.c.h.s8.bf16 %v5126_v52  ;;  %v1514_v52 = vunpack.c.h.s8.bf16 %v5140_v2 }
 0x253   :  { %3067 = vmatpush3.bf16.msra.mxu0 %v1488_v8  ;;  %v5129_v8 = vld [vmem:[#allocation105_spill] sm:$0xff] }
 0x254   :  { %3068 = vmatprep.subr.bf16.mxu0 %v1497_v28  ;;  %v1521_v35 = vunpack.c.l.s8.bf16 %v5129_v8  ;;  %v1530_v28 = vunpack.c.h.s8.bf16 %v5127_v29 }
 0x255   :  { %3003 = vmatpush3.bf16.msra.mxu1 %v1441_v41  ;;  %v5128_v41 = vld [vmem:[#allocation98_spill] sm:$0xff] }
 0x256   :  { %3004 = vmatprep.subr.bf16.mxu1 %v1450_v44  ;;  %v1507_v44 = vunpack.c.l.s8.bf16 %v5128_v41 }
 0x257   :  { %3069 = vmatpush3.bf16.msra.mxu0 %v1489_v13  ;;  %v1508_v13 = vunpack.c.h.s8.bf16 %v5128_v41  ;;  %v5144_v41 = vld [vmem:[#allocation114_spill] sm:$0xff] }
 0x258   :  { %3070 = vmatprep.subr.bf16.mxu0 %v1498_v32  ;;  %v1522_v32 = vunpack.c.h.s8.bf16 %v5129_v8 }
 0x259   :  { %3005 = vmatpush3.bf16.msra.mxu1 %v1442_v43  ;;  %v4623_v43 = vld.sshfl [vmem:[#allocation4 + $0x20] sm:$0x33 pattern:$0x75316420] }
 0x25a   :  { %3034 = vmatprep.subr.bf16.mxu1 %v1475_v39  ;;  %v1499_v39 = vunpack.c.l.s8.bf16 %v5130_v62  ;;  %v1792_v22 = vcombine.high %v4623_v43, %v4623_v43 }
 0x25b   :  { %3071 = vmatpush3.bf16.msra.mxu0 %v1490_v0  ;;  %v5133_v0 = vld [vmem:[#allocation118_spill] sm:$0xff] }
 0x25c   :  { %2238 = vmatmul.mubr.bf16.vlgmr.msra.gmra.mrb[32].mxu1 %v1732_v30  ;;  %3100 = vmatprep.subr.bf16.mxu0 %v1523_v15  ;;  %v5131_v30 = vld [vmem:[#allocation122_spill] sm:$0xff]  ;;  %v1547_v37 = vunpack.c.l.s8.bf16 %v5133_v0  ;;  %v4642_v10 = vrot.slane %v1792_v22, %v4254_v38 }
 0x25d   :  { %3035 = vmatpush3.bf16.msra.mxu1 %v1467_v9  ;;  %2317 = vmatprep.mubr.bf16.mxu1 %v1735_v24  ;;  %v1555_v40 = vunpack.c.l.s8.bf16 %v5131_v30  ;;  %v1500_v9 = vunpack.c.h.s8.bf16 %v5130_v62  ;;  %v5132_v24 = vld [vmem:[#allocation99_spill] sm:$0xff]  ;;  %v1556_v15 = vunpack.c.h.s8.bf16 %v5131_v30  ;;  %v1784_v30 = vcombine.high %v4593_v55, %v4593_v55 }
 0x25e   :  { %3036 = vmatprep.subr.bf16.mxu1 %v1476_v4  ;;  %2358 = vmatmul.mubr.bf16.vlgmr.msra.gmra.mrb[44].mxu0 %v4587_v31  ;;  %v1509_v4 = vunpack.c.l.s8.bf16 %v5132_v24  ;;  %v1510_v11 = vunpack.c.h.s8.bf16 %v5132_v24  ;;  %v5147_v24 = vld [vmem:[#allocation115_spill] sm:$0xff] }
 0x25f   :  { %3101 = vmatpush3.bf16.msra.mxu0 %v1515_v16  ;;  %2437 = vmatprep.mubr.bf16.mxu0 %v4593_v55  ;;  %v1557_v16 = vunpack.c.l.s8.bf16 %v5135_v25  ;;  %v5148_v55 = vld [vmem:[#allocation111_spill] sm:$0xff]  ;;  %v5151_v25 = vld [vmem:[#allocation117_spill] sm:$0xff] }
 0x260   :  { %3102 = vmatprep.subr.bf16.mxu0 %v1524_v5 }
 0x261   :  { %3037 = vmatpush3.bf16.msra.mxu1 %v1468_v48  ;;  %v5134_v48 = vld [vmem:[#allocation95_spill] sm:$0xff] }
 0x262   :  { %3038 = vmatprep.subr.bf16.mxu1 %v1477_v33  ;;  %v1501_v20 = vunpack.c.l.s8.bf16 %v5134_v48  ;;  %v1548_v33 = vunpack.c.h.s8.bf16 %v5133_v0  ;;  %v1502_v5 = vunpack.c.h.s8.bf16 %v5134_v48  ;;  %v1533_v0 = vunpack.c.l.s8.bf16 %v5148_v55  ;;  %v5149_v48 = vld [vmem:[#allocation116_spill] sm:$0xff] }
 0x263   :  { %3103 = vmatpush3.bf16.msra.mxu0 %v1516_v1 }
 0x264   :  { %3104 = vmatprep.subr.bf16.mxu0 %v1525_v51  ;;  %v5138_v51 = vld [vmem:[#allocation96_spill] sm:$0xff] }
 0x265   :  { %3039 = vmatpush3.bf16.msra.mxu1 %v1469_v54  ;;  %v1511_v54 = vunpack.c.l.s8.bf16 %v5136_v14 }
 0x266   :  { %3040 = vmatprep.subr.bf16.mxu1 %v1478_v50  ;;  %v5137_v50 = vld [vmem:[#allocation119_spill] sm:$0xff] }
 0x267   :  { %3105 = vmatpush3.bf16.msra.mxu0 %v1517_v47  ;;  %v1549_v1 = vunpack.c.l.s8.bf16 %v5137_v50  ;;  %v1559_v47 = vunpack.c.l.s8.bf16 %v5139_v17 }
 0x268   :  { %3106 = vmatprep.subr.bf16.mxu0 %v1526_v6  ;;  %v1504_v6 = vunpack.c.h.s8.bf16 %v5138_v51 }
 0x269   :  { %3041 = vmatpush3.bf16.msra.mxu1 %v1470_v57  ;;  %v1503_v57 = vunpack.c.l.s8.bf16 %v5138_v51 }
 0x26a   :  { %3042 = vmatprep.subr.bf16.mxu1 %v1479_v61  ;;  %v1550_v61 = vunpack.c.h.s8.bf16 %v5137_v50 }
 0x26b   :  { %3107 = vmatpush3.bf16.msra.mxu0 %v1518_v58 }
 0x26c   :  { %3108 = vmatprep.subr.bf16.mxu0 %v1527_v56  ;;  %v1560_v56 = vunpack.c.h.s8.bf16 %v5139_v17 }
 0x26d   :  { %3043 = vmatpush3.bf16.msra.mxu1 %v1471_v60  ;;  %v1513_v60 = vunpack.c.l.s8.bf16 %v5140_v2  ;;  %v5153_v2 = vld [vmem:[#allocation130_spill] sm:$0xff] }
 0x26e   :  { %3044 = vmatprep.subr.bf16.mxu1 %v1480_v53  ;;  %v5141_v53 = vld [vmem:[#allocation120_spill] sm:$0xff] }
 0x26f   :  { %3109 = vmatpush3.bf16.msra.mxu0 %v1519_v59  ;;  %v1551_v58 = vunpack.c.l.s8.bf16 %v5141_v53  ;;  %v1505_v59 = vunpack.c.l.s8.bf16 %v5142_v45 }
 0x270   :  { %3110 = vmatprep.subr.bf16.mxu0 %v1528_v3 }
 0x271   :  { %3045 = vmatpush3.bf16.msra.mxu1 %v1472_v46 }
 0x272   :  { %3046 = vmatprep.subr.bf16.mxu1 %v1481_v21 }
 0x273   :  { %3111 = vmatpush3.bf16.msra.mxu0 %v1520_v49 }
 0x274   :  { %3112 = vmatprep.subr.bf16.mxu0 %v1529_v12  ;;  %v1506_v12 = vunpack.c.h.s8.bf16 %v5142_v45  ;;  %v1572_v45 = vunpack.c.h.s8.bf16 %v5153_v2 }
 0x275   :  { %3047 = vmatpush3.bf16.msra.mxu1 %v1473_v23  ;;  %v1552_v23 = vunpack.c.h.s8.bf16 %v5141_v53 }
 0x276   :  { %3048 = vmatprep.subr.bf16.mxu1 %v1482_v7  ;;  %v5143_v7 = vld [vmem:[#allocation125_spill] sm:$0xff] }
 0x277   :  { %3113 = vmatpush3.bf16.msra.mxu0 %v1521_v35  ;;  %v1561_v49 = vunpack.c.l.s8.bf16 %v5143_v7  ;;  %v5145_v35 = vld [vmem:[#allocation121_spill] sm:$0xff]  ;;  %v1562_v62 = vunpack.c.h.s8.bf16 %v5143_v7 }
 0x278   :  { %3114 = vmatprep.subr.bf16.mxu0 %v1530_v28  ;;  %v1553_v28 = vunpack.c.l.s8.bf16 %v5145_v35  ;;  %v1554_v22 = vunpack.c.h.s8.bf16 %v5145_v35 }
 0x279   :  { %3049 = vmatpush3.bf16.msra.mxu1 %v1474_v19 }
 0x27a   :  { %3078 = vmatprep.subr.bf16.mxu1 %v1507_v44  ;;  %v1539_v44 = vunpack.c.l.s8.bf16 %v5144_v41 }
 0x27b   :  { %3115 = vmatpush3.bf16.msra.mxu0 %v1522_v32 }
 0x27c   :  { %2318 = vmatmul.mubr.bf16.vlgmr.msra.gmra.mrb[36].mxu1 %v1733_v36  ;;  %3144 = vmatprep.subr.bf16.mxu0 %v1555_v40  ;;  %v1540_v40 = vunpack.c.h.s8.bf16 %v5144_v41 }
 0x27d   :  { %3079 = vmatpush3.bf16.msra.mxu1 %v1499_v39  ;;  %2397 = vmatprep.mubr.bf16.mxu1 %v1783_v34  ;;  %v1781_v34 = vcombine.high %v4587_v31, %v4587_v31  ;;  %v4682_v31 = vrot.slane %v4623_v43, %v4254_v38  ;;  %v5150_v38 = vld [vmem:[#allocation112_spill] sm:$0xff] }
 0x27e   :  { %3080 = vmatprep.subr.bf16.mxu1 %v1508_v13  ;;  %2438 = vmatmul.mubr.bf16.vlgmr.msra.gmra.mrb[48].mxu0 %v4636_v42  ;;  %v5146_v13 = vld [vmem:[#allocation110_spill] sm:$0xff]  ;;  %v1535_v43 = vunpack.c.l.s8.bf16 %v5150_v38 }
 0x27f   :  { %3145 = vmatpush3.bf16.msra.mxu0 %v1547_v37  ;;  %2517 = vmatprep.mubr.bf16.mxu0 %v4642_v10  ;;  %v1531_v32 = vunpack.c.l.s8.bf16 %v5146_v13  ;;  %v1542_v37 = vunpack.c.h.s8.bf16 %v5147_v24 }
 0x280   :  { %3146 = vmatprep.subr.bf16.mxu0 %v1556_v15  ;;  %v1534_v15 = vunpack.c.h.s8.bf16 %v5148_v55 }
 0x281   :  { %3081 = vmatpush3.bf16.msra.mxu1 %v1500_v9  ;;  %v1532_v9 = vunpack.c.h.s8.bf16 %v5146_v13 }
 0x282   :  { %3082 = vmatprep.subr.bf16.mxu1 %v1509_v4  ;;  %v1541_v4 = vunpack.c.l.s8.bf16 %v5147_v24 }
 0x283   :  { %3147 = vmatpush3.bf16.msra.mxu0 %v1548_v33  ;;  %v1536_v33 = vunpack.c.h.s8.bf16 %v5150_v38 }
 0x284   :  { %3148 = vmatprep.subr.bf16.mxu0 %v1557_v16  ;;  %v1545_v16 = vunpack.c.l.s8.bf16 %v5151_v25 }
 0x285   :  { %3083 = vmatpush3.bf16.msra.mxu1 %v1501_v20  ;;  %v1543_v20 = vunpack.c.l.s8.bf16 %v5149_v48 }
 0x286   :  { %3084 = vmatprep.subr.bf16.mxu1 %v1510_v11  ;;  %v1544_v11 = vunpack.c.h.s8.bf16 %v5149_v48 }
 0x287   :  { %3149 = vmatpush3.bf16.msra.mxu0 %v1549_v1  ;;  %v5152_v1 = vld [vmem:[#allocation113_spill] sm:$0xff] }
 0x288   :  { %3150 = vmatprep.subr.bf16.mxu0 %v1558_v63  ;;  %v1537_v63 = vunpack.c.l.s8.bf16 %v5152_v1 }
 0x289   :  { %3085 = vmatpush3.bf16.msra.mxu1 %v1502_v5 }
 0x28a   :  { %3086 = vmatprep.subr.bf16.mxu1 %v1511_v54 }
 0x28b   :  { %3151 = vmatpush3.bf16.msra.mxu0 %v1550_v61 }
 0x28c   :  { %3152 = vmatprep.subr.bf16.mxu0 %v1559_v47  ;;  %v1538_v47 = vunpack.c.h.s8.bf16 %v5152_v1 }
 0x28d   :  { %3087 = vmatpush3.bf16.msra.mxu1 %v1503_v57  ;;  %v1546_v57 = vunpack.c.h.s8.bf16 %v5151_v25 }
 0x28e   :  { %3088 = vmatprep.subr.bf16.mxu1 %v1512_v26 }
 0x28f   :  { %v2808_v27 = vpop.f32.mrb[12].mxu1  ;;  %3153 = vmatpush3.bf16.msra.mxu0 %v1551_v58 }
 0x290   :  { %v2809_v46 = vpop.f32.mrb[13].mxu1  ;;  %3154 = vmatprep.subr.bf16.mxu0 %v1560_v56  ;;  %v1782_v56 = vcombine.high %v4636_v42, %v4636_v42 }
 0x291   :  { %v4662_v18 = vadd.f32 %v2809_v46, %v2808_v27  ;;  %v2811_v21 = vpop.f32.mrb[14].mxu1  ;;  %3089 = vmatpush3.bf16.msra.mxu1 %v1504_v6  ;;  %v2852_v29 = vpop.f32.mrb[24].mxu0  ;;  %v5154_v46 = vld [vmem:[#allocation126_spill] sm:$0xff] }
 0x292   :  { %v2812_v3 = vpop.f32.mrb[15].mxu1  ;;  %3090 = vmatprep.subr.bf16.mxu1 %v1513_v60  ;;  %v2853_v19 = vpop.f32.mrb[25].mxu0  ;;  %v1571_v60 = vunpack.c.l.s8.bf16 %v5153_v2  ;;  %v1563_v21 = vunpack.c.l.s8.bf16 %v5154_v46  ;;  %v2583_v2 = vld [vmem:[%s4795_s6 + $0x8] sm:$0xff] }
 0x293   :  { %v2854_v8 = vadd.f32 %v2853_v19, %v2852_v29  ;;  %3155 = vmatpush3.bf16.msra.mxu0 %v1552_v23  ;;  %v2855_v36 = vpop.f32.mrb[26].mxu0  ;;  %v5155_v3 = vld [vmem:[#allocation131_spill] sm:$0xff] }
 0x294   :  { %3156 = vmatprep.subr.bf16.mxu0 %v1561_v49  ;;  %v2856_v39 = vpop.f32.mrb[27].mxu0  ;;  %v5156_v23 = vld [vmem:[#allocation127_spill] sm:$0xff]  ;;  %v1574_v7 = vunpack.c.h.s8.bf16 %v5155_v3  ;;  %v5157_v49 = vld [vmem:[#allocation132_spill] sm:$0xff] }
 0x295   :  { %3091 = vmatpush3.bf16.msra.mxu1 %v1505_v59  ;;  %v1564_v59 = vunpack.c.h.s8.bf16 %v5154_v46  ;;  %v1565_v42 = vunpack.c.l.s8.bf16 %v5156_v23  ;;  %v1575_v29 = vunpack.c.l.s8.bf16 %v5157_v49  ;;  %v1576_v41 = vunpack.c.h.s8.bf16 %v5157_v49  ;;  %v2585_v46 = vld [vmem:[%s4795_s6 + $0x18] sm:$0xff] }
 0x296   :  { %3092 = vmatprep.subr.bf16.mxu1 %v1514_v52  ;;  %v1573_v52 = vunpack.c.l.s8.bf16 %v5155_v3 }
 0x297   :  { %3157 = vmatpush3.bf16.msra.mxu0 %v1553_v28 }
 0x298   :  { %3158 = vmatprep.subr.bf16.mxu0 %v1562_v62 }
 0x299   :  { %3093 = vmatpush3.bf16.msra.mxu1 %v1506_v12  ;;  %v5158_v12 = vld [vmem:[#allocation128_spill] sm:$0xff] }
 0x29a   :  { %3122 = vmatprep.subr.bf16.mxu1 %v1539_v44  ;;  %v1567_v19 = vunpack.c.l.s8.bf16 %v5158_v12  ;;  %v1568_v44 = vunpack.c.h.s8.bf16 %v5158_v12  ;;  %v2593_v12 = vld [vmem:[%s4795_s6 + $0x58] sm:$0xff] }
 0x29b   :  { %3159 = vmatpush3.bf16.msra.mxu0 %v1554_v22 }
 0x29c   :  { %2398 = vmatmul.mubr.bf16.vlgmr.msra.gmra.mrb[40].mxu1 %v1781_v34  ;;  %v5160_v34 = vld [vmem:[#allocation129_spill] sm:$0xff] }
 0x29d   :  { %3123 = vmatpush3.bf16.msra.mxu1 %v1531_v32  ;;  %2477 = vmatprep.mubr.bf16.mxu1 %v1784_v30  ;;  %v1569_v13 = vunpack.c.l.s8.bf16 %v5160_v34  ;;  %v1570_v24 = vunpack.c.h.s8.bf16 %v5160_v34 }
 0x29e   :  { %3124 = vmatprep.subr.bf16.mxu1 %v1540_v40  ;;  %2518 = vmatmul.mubr.bf16.vlgmr.msra.gmra.mrb[52].mxu0 %v4682_v31 }
 0x2a1   :  { %3125 = vmatpush3.bf16.msra.mxu1 %v1532_v9 }
 0x2a2   :  { %3126 = vmatprep.subr.bf16.mxu1 %v1541_v4 }
 0x2a5   :  { %3127 = vmatpush3.bf16.msra.mxu1 %v1533_v0 }
 0x2a6   :  { %3128 = vmatprep.subr.bf16.mxu1 %v1542_v37 }
 0x2a9   :  { %3129 = vmatpush3.bf16.msra.mxu1 %v1534_v15  ;;  %v1807_v15 = vcombine.high %v4682_v31, %v4682_v31 }
 0x2aa   :  { %3130 = vmatprep.subr.bf16.mxu1 %v1543_v20 }
 0x2ad   :  { %3131 = vmatpush3.bf16.msra.mxu1 %v1535_v43 }
 0x2ae   :  { %3132 = vmatprep.subr.bf16.mxu1 %v1544_v11 }
 0x2af   :  { %v2830_v5 = vpop.f32.mrb[16].mxu1 }
 0x2b0   :  { %v2831_v14 = vpop.f32.mrb[17].mxu1 }
 0x2b1   :  { %v2832_v54 = vadd.f32 %v2831_v14, %v2830_v5  ;;  %v2833_v50 = vpop.f32.mrb[18].mxu1  ;;  %3133 = vmatpush3.bf16.msra.mxu1 %v1536_v33  ;;  %v2896_v61 = vpop.f32.mrb[28].mxu0 }
 0x2b2   :  { %v2834_v51 = vpop.f32.mrb[19].mxu1  ;;  %3134 = vmatprep.subr.bf16.mxu1 %v1545_v16  ;;  %v2897_v6 = vpop.f32.mrb[29].mxu0 }
 0x2b3   :  { %v1920_v26 = vadd.f32 %v2832_v54, %v4662_v18  ;;  %v2898_v53 = vadd.f32 %v2897_v6, %v2896_v61  ;;  %v2899_v58 = vpop.f32.mrb[30].mxu0  ;;  %v1808_v18 = vcombine.high %v4642_v10, %v4642_v10  ;;  %v1566_v10 = vunpack.c.h.s8.bf16 %v5156_v23  ;;  %v2582_v6 = vld [vmem:[%s4795_s6] sm:$0xff]  ;;  %v2589_v23 = vld [vmem:[%s4795_s6 + $0x38] sm:$0xff] }
 0x2b4   :  { %v2900_v27 = vpop.f32.mrb[31].mxu0 }
 0x2b5   :  { %v1960_v17 = vadd.f32 %v2854_v8, %v1920_v26  ;;  %3135 = vmatpush3.bf16.msra.mxu1 %v1537_v63  ;;  %v5159_v8 = vld [vmem:[#allocation133_spill] sm:$0xff]  ;;  %v3420_v27 = vmov 0.0|0.0  }
 0x2b6   :  { %3136 = vmatprep.subr.bf16.mxu1 %v1546_v57  ;;  %v1577_v35 = vunpack.c.l.s8.bf16 %v5159_v8  ;;  %v1578_v30 = vunpack.c.h.s8.bf16 %v5159_v8  ;;  %3240 = vmatprep.subr.bf16.mxu0 %v3420_v27 }
 0x2b9   :  { %3137 = vmatpush3.bf16.msra.mxu1 %v1538_v47 }
 0x2ba   :  { %3166 = vmatprep.subr.bf16.mxu1 %v1571_v60  ;;  %v2584_v60 = vld [vmem:[%s4795_s6 + $0x10] sm:$0xff] }
 0x2bc   :  { %2478 = vmatmul.mubr.bf16.vlgmr.msra.gmra.mrb[44].mxu1 %v1782_v56  ;;  %v3241_v56 = vpack.c.bf16 %v2583_v2, %v2582_v6 }
 0x2bd   :  { %3167 = vmatpush3.bf16.msra.mxu1 %v1563_v21  ;;  %2557 = vmatprep.mubr.bf16.mxu1 %v1808_v18  ;;  %v3244_v18 = vpack.c.bf16 %v2585_v46, %v2584_v60 }
 0x2be   :  { %3168 = vmatprep.subr.bf16.mxu1 %v1572_v45  ;;  %3242 = vmatpush3.bf16.msra.mxu0 %v3241_v56  ;;  %v2586_v45 = vld [vmem:[%s4795_s6 + $0x20] sm:$0xff] }
 0x2bf   :  { %3243 = vmatprep.subr.bf16.mxu0 %v3420_v27 }
 0x2c1   :  { %3169 = vmatpush3.bf16.msra.mxu1 %v1564_v59  ;;  %v2587_v59 = vld [vmem:[%s4795_s6 + $0x28] sm:$0xff] }
 0x2c2   :  { %3170 = vmatprep.subr.bf16.mxu1 %v1573_v52  ;;  %3245 = vmatpush3.bf16.msra.mxu0 %v3244_v18  ;;  %v3247_v3 = vpack.c.bf16 %v2587_v59, %v2586_v45  ;;  %v2588_v52 = vld [vmem:[%s4795_s6 + $0x30] sm:$0xff] }
 0x2c3   :  { %3246 = vmatprep.subr.bf16.mxu0 %v3420_v27 }
 0x2c5   :  { %3171 = vmatpush3.bf16.msra.mxu1 %v1565_v42  ;;  %v3250_v42 = vpack.c.bf16 %v2589_v23, %v2588_v52 }
 0x2c6   :  { %3172 = vmatprep.subr.bf16.mxu1 %v1574_v7  ;;  %3248 = vmatpush3.bf16.msra.mxu0 %v3247_v3  ;;  %v2590_v7 = vld [vmem:[%s4795_s6 + $0x40] sm:$0xff] }
 0x2c7   :  { %3249 = vmatprep.subr.bf16.mxu0 %v3420_v27  ;;  %v2788_v3 = vld [vmem:[%s4793_s4] ss:$0 sm:$0xff]  ;;  %s3388_s4 = scalar_lea.vmem %s2684_s3, 32 }
 0x2c8   :  { %p3389_p8 = scmp.ne.s32.totalorder %s2684_s3, %s3388_s4  ;;  %p3394_p10 = scmp.lt.s32.totalorder %s3388_s4, %s3388_s4 }
 0x2c9   :  { %3173 = vmatpush3.bf16.msra.mxu1 %v1566_v10  ;;  %v2591_v10 = vld [vmem:[%s4795_s6 + $0x48] sm:$0xff] }
 0x2ca   :  { %3174 = vmatprep.subr.bf16.mxu1 %v1575_v29  ;;  %3251 = vmatpush3.bf16.msra.mxu0 %v3250_v42  ;;  %v3253_v49 = vpack.c.bf16 %v2591_v10, %v2590_v7  ;;  %v2592_v29 = vld [vmem:[%s4795_s6 + $0x50] sm:$0xff]  ;;  %v2789_v42 = vld [vmem:[%s4794_s5] ss:$0 sm:$0xff]  ;;  %p3395_p11 = por %p3394_p10, %p3393_p9 }
 0x2cb   :  { %3252 = vmatprep.subr.bf16.mxu0 %v3420_v27 }
 0x2cc   :  { %p3396_p12 = pnand %p3395_p11, %p3389_p8 }
 0x2cd   :  { %3175 = vmatpush3.bf16.msra.mxu1 %v1567_v19  ;;  %v3256_v19 = vpack.c.bf16 %v2593_v12, %v2592_v29  ;;  %v2790_v29 = vld [vmem:[%s4796_s7] ss:$0 sm:$0xff] }
 0x2ce   :  { %3176 = vmatprep.subr.bf16.mxu1 %v1576_v41  ;;  %3254 = vmatpush3.bf16.msra.mxu0 %v3253_v49 }
 0x2cf   :  { %v2874_v28 = vpop.f32.mrb[20].mxu1  ;;  %3255 = vmatprep.subr.bf16.mxu0 %v3420_v27 }
 0x2d0   :  { %v2875_v36 = vpop.f32.mrb[21].mxu1 }
 0x2d1   :  { %v2876_v62 = vadd.f32 %v2875_v36, %v2874_v28  ;;  %v2877_v39 = vpop.f32.mrb[22].mxu1  ;;  %3177 = vmatpush3.bf16.msra.mxu1 %v1568_v44  ;;  %v2940_v22 = vpop.f32.mrb[32].mxu0  ;;  %v2594_v28 = vld [vmem:[%s4795_s6 + $0x60] sm:$0xff]  ;;  %v2595_v36 = vld [vmem:[%s4795_s6 + $0x68] sm:$0xff] }
 0x2d2   :  { %v2878_v32 = vpop.f32.mrb[23].mxu1  ;;  %3178 = vmatprep.subr.bf16.mxu1 %v1577_v35  ;;  %v2941_v4 = vpop.f32.mrb[33].mxu0  ;;  %3257 = vmatpush3.bf16.msra.mxu0 %v3256_v19  ;;  %v3259_v39 = vpack.c.bf16 %v2595_v36, %v2594_v28 }
 0x2d3   :  { %v2000_v40 = vadd.f32 %v2876_v62, %v1960_v17  ;;  %v2942_v55 = vadd.f32 %v2941_v4, %v2940_v22  ;;  %v2943_v0 = vpop.f32.mrb[34].mxu0  ;;  %3258 = vmatprep.subr.bf16.mxu0 %v3420_v27  ;;  %v2597_v22 = vld [vmem:[%s4795_s6 + $0x78] sm:$0xff] }
 0x2d4   :  { %v2944_v37 = vpop.f32.mrb[35].mxu0  ;;  %v3422_v0 = vmov 0.0  }
 0x2d5   :  { %v2040_v9 = vadd.f32 %v2898_v53, %v2000_v40  ;;  %3179 = vmatpush3.bf16.msra.mxu1 %v1569_v13  ;;  %v2596_v40 = vld [vmem:[%s4795_s6 + $0x70] sm:$0xff]  ;;  %3237 = vmatprep.mubr.msk.f32.mxu0 %vm3421_vm2, %v3422_v0 }
 0x2d6   :  { %3180 = vmatprep.subr.bf16.mxu1 %v1578_v30  ;;  %3260 = vmatpush3.bf16.msra.mxu0 %v3259_v39  ;;  %v3262_v4 = vpack.c.bf16 %v2597_v22, %v2596_v40 }
 0x2d7   :  { %3261 = vmatprep.subr.bf16.mxu0 %v3420_v27 }
 0x2d9   :  { %3181 = vmatpush3.bf16.msra.mxu1 %v1570_v24 }
 0x2da   :  { %3263 = vmatpush3.bf16.msra.mxu0 %v3262_v4 }
 0x2dc   :  { %2558 = vmatmul.mubr.bf16.vlgmr.msra.gmra.mrb[48].mxu1 %v1807_v15 }
 0x2ef   :  { %v2918_v48 = vpop.f32.mrb[24].mxu1 }
 0x2f0   :  { %v2919_v20 = vpop.f32.mrb[25].mxu1 }
 0x2f1   :  { %v2920_v38 = vadd.f32 %v2919_v20, %v2918_v48  ;;  %v2921_v43 = vpop.f32.mrb[26].mxu1  ;;  %v2984_v25 = vpop.f32.mrb[36].mxu0 }
 0x2f2   :  { %v2922_v11 = vpop.f32.mrb[27].mxu1  ;;  %v2985_v5 = vpop.f32.mrb[37].mxu0 }
 0x2f3   :  { %v2080_v33 = vadd.f32 %v2920_v38, %v2040_v9  ;;  %v2986_v14 = vadd.f32 %v2985_v5, %v2984_v25  ;;  %v2987_v54 = vpop.f32.mrb[38].mxu0 }
 0x2f4   :  { %v2988_v50 = vpop.f32.mrb[39].mxu0 }
 0x2f5   :  { %v2120_v16 = vadd.f32 %v2942_v55, %v2080_v33 }
 0x30f   :  { %v2962_v1 = vpop.f32.mrb[28].mxu1 }
 0x310   :  { %v2963_v63 = vpop.f32.mrb[29].mxu1 }
 0x311   :  { %v2964_v51 = vadd.f32 %v2963_v63, %v2962_v1  ;;  %v2965_v57 = vpop.f32.mrb[30].mxu1  ;;  %v3028_v61 = vpop.f32.mrb[40].mxu0 }
 0x312   :  { %v2966_v26 = vpop.f32.mrb[31].mxu1  ;;  %v3029_v47 = vpop.f32.mrb[41].mxu0 }
 0x313   :  { %v2160_v31 = vadd.f32 %v2964_v51, %v2120_v16  ;;  %v3030_v53 = vadd.f32 %v3029_v47, %v3028_v61  ;;  %v3031_v58 = vpop.f32.mrb[42].mxu0 }
 0x314   :  { %v3032_v21 = vpop.f32.mrb[43].mxu0 }
 0x315   :  { %v2200_v17 = vadd.f32 %v2986_v14, %v2160_v31 }
 0x32f   :  { %v3006_v41 = vpop.f32.mrb[32].mxu1 }
 0x330   :  { %v3007_v44 = vpop.f32.mrb[33].mxu1 }
 0x331   :  { %v3008_v8 = vadd.f32 %v3007_v44, %v3006_v41  ;;  %v3009_v35 = vpop.f32.mrb[34].mxu1  ;;  %v3072_v13 = vpop.f32.mrb[44].mxu0 }
 0x332   :  { %v3010_v62 = vpop.f32.mrb[35].mxu1  ;;  %v3073_v30 = vpop.f32.mrb[45].mxu0 }
 0x333   :  { %v2240_v34 = vadd.f32 %v3008_v8, %v2200_v17  ;;  %v3074_v9 = vadd.f32 %v3073_v30, %v3072_v13  ;;  %v3075_v24 = vpop.f32.mrb[46].mxu0 }
 0x334   :  { %v3076_v55 = vpop.f32.mrb[47].mxu0 }
 0x335   :  { %v2280_v32 = vadd.f32 %v3030_v53, %v2240_v34 }
 0x34f   :  { %v3050_v37 = vpop.f32.mrb[36].mxu1 }
 0x350   :  { %v3051_v15 = vpop.f32.mrb[37].mxu1 }
 0x351   :  { %v3052_v48 = vadd.f32 %v3051_v15, %v3050_v37  ;;  %v3053_v20 = vpop.f32.mrb[38].mxu1  ;;  %v3116_v11 = vpop.f32.mrb[48].mxu0 }
 0x352   :  { %v3054_v38 = vpop.f32.mrb[39].mxu1  ;;  %v3117_v25 = vpop.f32.mrb[49].mxu0 }
 0x353   :  { %v2320_v43 = vadd.f32 %v3052_v48, %v2280_v32  ;;  %v3118_v16 = vadd.f32 %v3117_v25, %v3116_v11  ;;  %v3119_v5 = vpop.f32.mrb[50].mxu0 }
 0x354   :  { %v3120_v14 = vpop.f32.mrb[51].mxu0 }
 0x355   :  { %v2360_v33 = vadd.f32 %v3074_v9, %v2320_v43 }
 0x36f   :  { %v3094_v54 = vpop.f32.mrb[40].mxu1 }
 0x370   :  { %v3095_v50 = vpop.f32.mrb[41].mxu1 }
 0x371   :  { %v3096_v1 = vadd.f32 %v3095_v50, %v3094_v54  ;;  %v3097_v63 = vpop.f32.mrb[42].mxu1  ;;  %v3160_v26 = vpop.f32.mrb[52].mxu0 }
 0x372   :  { %v3098_v51 = vpop.f32.mrb[43].mxu1  ;;  %v3161_v61 = vpop.f32.mrb[53].mxu0 }
 0x373   :  { %v2400_v57 = vadd.f32 %v3096_v1, %v2360_v33  ;;  %v3162_v17 = vadd.f32 %v3161_v61, %v3160_v26  ;;  %v3163_v47 = vpop.f32.mrb[54].mxu0 }
 0x374   :  { %v3164_v6 = vpop.f32.mrb[55].mxu0 }
 0x375   :  { %v2440_v31 = vadd.f32 %v3118_v16, %v2400_v57 }
 0x38f   :  { %v3138_v2 = vpop.f32.mrb[44].mxu1 }
 0x390   :  { %v3139_v60 = vpop.f32.mrb[45].mxu1 }
 0x391   :  { %v3140_v53 = vadd.f32 %v3139_v60, %v3138_v2  ;;  %v3141_v58 = vpop.f32.mrb[46].mxu1 }
 0x392   :  { %v3142_v27 = vpop.f32.mrb[47].mxu1 }
 0x393   :  { %v2480_v56 = vadd.f32 %v3140_v53, %v2440_v31 }
 0x395   :  { %v2520_v46 = vadd.f32 %v3162_v17, %v2480_v56 }
 0x3af   :  { %v3182_v21 = vpop.f32.mrb[48].mxu1 }
 0x3b0   :  { %v3183_v18 = vpop.f32.mrb[49].mxu1 }
 0x3b1   :  { %v3184_v45 = vadd.f32 %v3183_v18, %v3182_v21  ;;  %v3185_v59 = vpop.f32.mrb[50].mxu1 }
 0x3b2   :  { %v3186_v52 = vpop.f32.mrb[51].mxu1 }
 0x3b3   :  { %v2560_v23 = vadd.f32 %v3184_v45, %v2520_v46 }
 0x3b5   :  { %v2572_v7 = vmul.f32 %v2788_v3, %v2560_v23 }
 0x3b7   :  { %v2580_v10 = vadd.f32 %v2789_v42, %v2572_v7 }
 0x3b9   :  { %v2581_v49 = vmax.f32 %v2580_v10, 0.0 }
 0x3bb   :  { %3238 = vmatmul.mubr.f32.vlgmr.msra.gmra.mrb[56].mxu0 %v2581_v49 }
 0x48e   :  { %v2671_v12 = vpop.f32.mrb[56].mxu0 }
 0x48f   :  { %v2672_v19 = vadd.f32 %v2790_v29, %v2671_v12  ;;  %v3239_v41 = vpop.f32.mrb[57].mxu0 }
 0x491   :  { %2676 = vst.msk [vmem:[#allocation8] sm:$0x3] %vm2675_vm3, %v2672_v19 }
 0x492   :  { %3399 = shalt.err (!%p3396_p12)
}
 0x493   :  { %s3400_s9 = scalar_lea.hbm %s4797_s8, 32 }
 0x494   :  { %p3401_p13 = scmp.ne.s32.totalorder %s4797_s8, %s3400_s9  ;;  %p3404_p0 = scmp.lt.u32.totalorder %s3400_s9, %s4797_s8 }
 0x496   :  { %p3406_p1 = pnand %p3404_p0, %p3401_p13 }
 0x498   :  { %3409 = shalt.err (!%p3406_p1)
}
 0x499   :  { %2686 = dma.vmem_to_hbm [thread:$0]  %s2684_s3, 32, %s4797_s8, [#allocation7]  }
 0x49a   :  { %3414 = dma.done.wait [#allocation7], 32  }
 0x49b   :  { %3415 = vsyncadd [#allocation7], 4294967264 }
 0x49c   :  { %2690 = vsyncpa [#allocation6], 1 }
 0x49d   :  { %2691 = vsyncpa [#allocation7], 1 }
 0x49e   :  { %2692 = vsyncmov [#allocation3] }
 0x4a1   :  { %s2693_s15 = vpop.sfrf %2692 }
 0x4a2   :  { %p2791_p2 = scmp.ne.s32.totalorder %s2693_s15, 0 }
 0x4a4   :  { %2697 = shalt.err (%p2791_p2)  }

</bundles_post_ra>
